<compile_context>
chip_gen: v5e
topology: v5e:2x2
jax: 0.10.0
libtpu: 0.0.40
codegen_flags: <defaults>
</compile_context>

<pallas_src>
import jax
import jax.numpy as jnp
from jax.experimental import pallas as pl
from jax.experimental.pallas import tpu as pltpu

# ----------------------------- model hyperparams -----------------------------
B = 2          # batch
S = 8          # sequence length
D = 32         # d_model
NHEAD = 4      # attention heads
HD = D // NHEAD
DFF = 64       # feed-forward hidden
NUM_LAYERS = 2
EPS = 1e-5
SCALE = 1.0 / (HD ** 0.5)

# TODO(synk): dropout (training mode) is not implemented; this matches the
# PyTorch module in eval mode / dropout=0.


# ------------------------------- Pallas kernel --------------------------------
def encoder_stack_kernel(x_ref, pos_ref,
                         wqkv_ref,   # (L*3, NHEAD, D, HD)   head-split Wq/Wk/Wv
                         bqkv_ref,   # (L*3, NHEAD, 1, HD)   head-split bq/bk/bv
                         wo_ref,     # (L, NHEAD, HD, D)     head-split Wo
                         w1_ref,     # (L, D, DFF)
                         w2_ref,     # (L, DFF, D)
                         vec_ref,    # (L, 6, D)   rows: bo, ln1w, ln1b, b2, ln2w, ln2b
                         b1_ref,     # (L, 1, DFF)
                         lnf_ref,    # (2, D)      rows: final-LN weight, bias
                         out_ref):
    """All NUM_LAYERS post-norm encoder layers + final LayerNorm, one batch elem."""
    x = x_ref[0].astype(jnp.float32)        # (S, D)
    pos = pos_ref[0].astype(jnp.float32)    # (S, D)

    def layer_norm(t, w, b):
        mu = jnp.mean(t, axis=-1, keepdims=True)
        var = jnp.mean((t - mu) ** 2, axis=-1, keepdims=True)
        return (t - mu) * jax.lax.rsqrt(var + EPS) * w + b

    for l in range(NUM_LAYERS):
        wq = wqkv_ref[3 * l + 0]            # (H, D, HD)
        wk = wqkv_ref[3 * l + 1]
        wv = wqkv_ref[3 * l + 2]
        bq = bqkv_ref[3 * l + 0]            # (H, 1, HD)
        bk = bqkv_ref[3 * l + 1]
        bv = bqkv_ref[3 * l + 2]
        wo = wo_ref[l]                      # (H, HD, D)
        vd = vec_ref[l]                     # (6, D)
        bo, ln1w, ln1b = vd[0:1], vd[1:2], vd[2:3]
        b2, ln2w, ln2b = vd[3:4], vd[4:5], vd[5:6]
        b1 = b1_ref[l]                      # (1, DFF)

        # --- self-attention (q = k = x + pos, v = x), all heads batched ---
        qk_in = x + pos
        qk_b = jnp.broadcast_to(qk_in[None, :, :], (NHEAD, S, D))
        x_b = jnp.broadcast_to(x[None, :, :], (NHEAD, S, D))

        q = jnp.einsum('hsd,hdk->hsk', qk_b, wq,
                       preferred_element_type=jnp.float32) + bq     # (H, S, HD)
        k = jnp.einsum('hsd,hdk->hsk', qk_b, wk,
                       preferred_element_type=jnp.float32) + bk
        v = jnp.einsum('hsd,hdk->hsk', x_b, wv,
                       preferred_element_type=jnp.float32) + bv

        scores = jnp.einsum('hsk,htk->hst', q, k,
                            preferred_element_type=jnp.float32) * SCALE
        scores = scores - jnp.max(scores, axis=-1, keepdims=True)
        p = jnp.exp(scores)
        p = p * pl.reciprocal(jnp.sum(p, axis=-1, keepdims=True), approx=True)
        heads = jnp.einsum('hst,htk->hsk', p, v,
                           preferred_element_type=jnp.float32)      # (H, S, HD)
        # output projection: one batched dot over heads, summed over the head axis
        attn = jnp.einsum('hsk,hkd->hsd', heads, wo,
                          preferred_element_type=jnp.float32)        # (H, S, D)
        attn = jnp.sum(attn, axis=0) + bo                            # (S, D)

        # --- residual + layernorm 1 ---
        y = layer_norm(x + attn, ln1w, ln1b)

        # --- feed-forward (Linear -> ReLU -> Linear) ---
        h1 = jnp.dot(y, w1_ref[l], preferred_element_type=jnp.float32) + b1
        h1 = jnp.maximum(h1, 0.0)
        ff = jnp.dot(h1, w2_ref[l], preferred_element_type=jnp.float32) + b2

        # --- residual + layernorm 2 ---
        x = layer_norm(y + ff, ln2w, ln2b)

    # --- final encoder norm ---
    lnf = lnf_ref[...]
    x = layer_norm(x, lnf[0:1], lnf[1:2])
    out_ref[0] = x.astype(out_ref.dtype)


# --------------------------------- wrapper ------------------------------------
def _const_spec(arr):
    n = arr.ndim
    return pl.BlockSpec(arr.shape, lambda b, n=n: (0,) * n)


def transformer_encoder(x, pos, packed_params):
    Bx, Sx, Dx = x.shape
    bspec = pl.BlockSpec((1, Sx, Dx), lambda b: (b, 0, 0))
    in_specs = [bspec, bspec] + [_const_spec(p) for p in packed_params]
    return pl.pallas_call(
        encoder_stack_kernel,
        out_shape=jax.ShapeDtypeStruct((Bx, Sx, Dx), x.dtype),
        grid=(Bx,),
        in_specs=in_specs,
        out_specs=bspec,
        compiler_params=pltpu.CompilerParams(
            dimension_semantics=("parallel",)),   # v7x: one sample per TensorCore
    )(x, pos, *packed_params)


# ----------------------- parameter packing for the kernel ----------------------
def pack_params(all_layer_params, norm_params):
    wqkv, bqkv, wo, w1, w2, vec_d, b1 = [], [], [], [], [], [], []
    for (wq, bq_, wk, bk_, wv, bv_, wo_, bo_, ln1w, ln1b,
         w1_, b1_, w2_, b2_, ln2w, ln2b) in all_layer_params:
        for w in (wq, wk, wv):
            # (D, D) -> (NHEAD, D, HD): head h uses output columns [h*HD,(h+1)*HD)
            wqkv.append(w.reshape(D, NHEAD, HD).transpose(1, 0, 2))
        for bias in (bq_, bk_, bv_):
            bqkv.append(bias.reshape(NHEAD, 1, HD))
        # (D, D) -> (NHEAD, HD, D): head h uses input rows [h*HD,(h+1)*HD)
        wo.append(wo_.reshape(NHEAD, HD, D))
        w1.append(w1_)
        w2.append(w2_)
        vec_d.append(jnp.concatenate([bo_, ln1w, ln1b, b2_, ln2w, ln2b], axis=0))
        b1.append(b1_)
    lnw, lnb = norm_params
    return (
        jnp.stack(wqkv),                     # (L*3, H, D, HD)
        jnp.stack(bqkv),                     # (L*3, H, 1, HD)
        jnp.stack(wo),                       # (L, H, HD, D)
        jnp.stack(w1),                       # (L, D, DFF)
        jnp.stack(w2),                       # (L, DFF, D)
        jnp.stack(vec_d),                    # (L, 6, D)
        jnp.stack(b1),                       # (L, 1, DFF)
        jnp.concatenate([lnw, lnb], axis=0), # (2, D)
    )


# -------------------------- deterministic parameters ---------------------------
def init_layer_params(key):
    ks = jax.random.split(key, 6)
    std = 0.02
    # NOTE: weights are applied as x @ W (a PyTorch checkpoint would need W.T).
    wq = std * jax.random.normal(ks[0], (D, D), jnp.float32)
    wk = std * jax.random.normal(ks[1], (D, D), jnp.float32)
    wv = std * jax.random.normal(ks[2], (D, D), jnp.float32)
    wo = std * jax.random.normal(ks[3], (D, D), jnp.float32)
    w1 = std * jax.random.normal(ks[4], (D, DFF), jnp.float32)
    w2 = std * jax.random.normal(ks[5], (DFF, D), jnp.float32)
    bq = jnp.zeros((1, D), jnp.float32)
    bk = jnp.zeros((1, D), jnp.float32)
    bv = jnp.zeros((1, D), jnp.float32)
    bo = jnp.zeros((1, D), jnp.float32)
    b1 = jnp.zeros((1, DFF), jnp.float32)
    b2 = jnp.zeros((1, D), jnp.float32)
    ln1w = jnp.ones((1, D), jnp.float32)
    ln1b = jnp.zeros((1, D), jnp.float32)
    ln2w = jnp.ones((1, D), jnp.float32)
    ln2b = jnp.zeros((1, D), jnp.float32)
    return (wq, bq, wk, bk, wv, bv, wo, bo, ln1w, ln1b,
            w1, b1, w2, b2, ln2w, ln2b)


# ------------------------------ pure-JAX reference ------------------------------
def encoder_reference(x, pos, all_layer_params, norm_params):
    def ln(t, w, b):
        mu = jnp.mean(t, axis=-1, keepdims=True)
        var = jnp.mean((t - mu) ** 2, axis=-1, keepdims=True)
        return (t - mu) / jnp.sqrt(var + EPS) * w + b

    def split_heads(t):
        return t.reshape(B, S, NHEAD, HD).transpose(0, 2, 1, 3)

    out = x
    for (wq, bq, wk, bk, wv, bv, wo, bo, ln1w, ln1b,
         w1, b1, w2, b2, ln2w, ln2b) in all_layer_params:
        qk_in = out + pos
        q = split_heads(qk_in @ wq + bq)
        k = split_heads(qk_in @ wk + bk)
        v = split_heads(out @ wv + bv)
        s = jnp.einsum('bhsd,bhtd->bhst', q, k) * SCALE
        p = jax.nn.softmax(s, axis=-1)
        o = jnp.einsum('bhst,bhtd->bhsd', p, v)
        o = o.transpose(0, 2, 1, 3).reshape(B, S, D)
        attn = o @ wo + bo
        y = ln(out + attn, ln1w, ln1b)
        ff = jnp.maximum(y @ w1 + b1, 0.0) @ w2 + b2
        out = ln(y + ff, ln2w, ln2b)
    return ln(out, *norm_params)


if __name__ == "__main__":
    root = jax.random.PRNGKey(0)
    kx, kpos, kparams = jax.random.split(root, 3)

    x = jax.random.normal(kx, (B, S, D), jnp.float32)      # src, layout (B, S, D)
    pos = jax.random.normal(kpos, (B, S, D), jnp.float32)  # positional embedding

    all_layer_params = [
        init_layer_params(jax.random.fold_in(kparams, i)) for i in range(NUM_LAYERS)
    ]
    # final norm (LayerNorm(D)): weight=1, bias=0 like PyTorch default init
    norm_params = (jnp.ones((1, D), jnp.float32), jnp.zeros((1, D), jnp.float32))

    packed = pack_params(all_layer_params, norm_params)

    out = transformer_encoder(x, pos, packed)
    out = jax.block_until_ready(out)

    assert out.shape == (B, S, D)
    assert bool(jnp.all(jnp.isfinite(out)))

    ref = encoder_reference(x, pos, all_layer_params, norm_params)
    max_err = float(jnp.max(jnp.abs(out - ref)))
    assert max_err < 5e-2, f"mismatch vs reference: max abs err {max_err}"

    print("KERNEL_OK")
</pallas_src>

<mosaic_0001>
module attributes {stable_mosaic.version = 11 : i64} {
  func.func @encoder_stack_kernel(%arg0: i32, %arg1: memref<1x8x32xf32, #tpu.memory_space<vmem>>, %arg2: memref<1x8x32xf32, #tpu.memory_space<vmem>>, %arg3: memref<6x4x32x8xf32, #tpu.memory_space<vmem>>, %arg4: memref<6x4x1x8xf32, #tpu.memory_space<vmem>>, %arg5: memref<2x4x8x32xf32, #tpu.memory_space<vmem>>, %arg6: memref<2x32x64xf32, #tpu.memory_space<vmem>>, %arg7: memref<2x64x32xf32, #tpu.memory_space<vmem>>, %arg8: memref<2x6x32xf32, #tpu.memory_space<vmem>>, %arg9: memref<2x1x64xf32, #tpu.memory_space<vmem>>, %arg10: memref<2x32xf32, #tpu.memory_space<vmem>>, %arg11: memref<1x8x32xf32, #tpu.memory_space<vmem>>) attributes {dimension_semantics = [#tpu.dimension_semantics<parallel>], iteration_bounds = array<i64: 2>, scalar_prefetch = 0 : i64, scratch_operands = 0 : i64, tpu.core_type = #tpu.core_type<tc>, window_params = [{transform_indices = @transform_0, window_bounds = array<i64: 1, 8, 32>}, {transform_indices = @transform_1, window_bounds = array<i64: 1, 8, 32>}, {pipeline_mode = #tpu.pipeline_mode<synchronous>, transform_indices = @transform_2, window_bounds = array<i64: 6, 4, 32, 8>}, {pipeline_mode = #tpu.pipeline_mode<synchronous>, transform_indices = @transform_3, window_bounds = array<i64: 6, 4, 1, 8>}, {pipeline_mode = #tpu.pipeline_mode<synchronous>, transform_indices = @transform_4, window_bounds = array<i64: 2, 4, 8, 32>}, {pipeline_mode = #tpu.pipeline_mode<synchronous>, transform_indices = @transform_5, window_bounds = array<i64: 2, 32, 64>}, {pipeline_mode = #tpu.pipeline_mode<synchronous>, transform_indices = @transform_6, window_bounds = array<i64: 2, 64, 32>}, {pipeline_mode = #tpu.pipeline_mode<synchronous>, transform_indices = @transform_7, window_bounds = array<i64: 2, 6, 32>}, {pipeline_mode = #tpu.pipeline_mode<synchronous>, transform_indices = @transform_8, window_bounds = array<i64: 2, 1, 64>}, {pipeline_mode = #tpu.pipeline_mode<synchronous>, transform_indices = @transform_9, window_bounds = array<i64: 2, 32>}, {transform_indices = @transform_10, window_bounds = array<i64: 1, 8, 32>}]} {
    %c0 = arith.constant 0 : index
    %c0_0 = arith.constant 0 : index
    %c0_1 = arith.constant 0 : index
    %0 = vector.load %arg1[%c0, %c0_0, %c0_1] : memref<1x8x32xf32, #tpu.memory_space<vmem>>, vector<1x8x32xf32>
    %1 = vector.shape_cast %0 : vector<1x8x32xf32> to vector<8x32xf32>
    %c0_2 = arith.constant 0 : index
    %c0_3 = arith.constant 0 : index
    %c0_4 = arith.constant 0 : index
    %2 = vector.load %arg2[%c0_2, %c0_3, %c0_4] : memref<1x8x32xf32, #tpu.memory_space<vmem>>, vector<1x8x32xf32>
    %3 = vector.shape_cast %2 : vector<1x8x32xf32> to vector<8x32xf32>
    %c0_5 = arith.constant 0 : index
    %c0_6 = arith.constant 0 : index
    %c0_7 = arith.constant 0 : index
    %c0_8 = arith.constant 0 : index
    %4 = vector.load %arg3[%c0_5, %c0_6, %c0_7, %c0_8] : memref<6x4x32x8xf32, #tpu.memory_space<vmem>>, vector<1x4x32x8xf32>
    %5 = vector.shape_cast %4 : vector<1x4x32x8xf32> to vector<4x32x8xf32>
    %c1 = arith.constant 1 : index
    %c0_9 = arith.constant 0 : index
    %c0_10 = arith.constant 0 : index
    %c0_11 = arith.constant 0 : index
    %6 = vector.load %arg3[%c1, %c0_9, %c0_10, %c0_11] : memref<6x4x32x8xf32, #tpu.memory_space<vmem>>, vector<1x4x32x8xf32>
    %7 = vector.shape_cast %6 : vector<1x4x32x8xf32> to vector<4x32x8xf32>
    %c2 = arith.constant 2 : index
    %c0_12 = arith.constant 0 : index
    %c0_13 = arith.constant 0 : index
    %c0_14 = arith.constant 0 : index
    %8 = vector.load %arg3[%c2, %c0_12, %c0_13, %c0_14] : memref<6x4x32x8xf32, #tpu.memory_space<vmem>>, vector<1x4x32x8xf32>
    %9 = vector.shape_cast %8 : vector<1x4x32x8xf32> to vector<4x32x8xf32>
    %c0_15 = arith.constant 0 : index
    %c0_16 = arith.constant 0 : index
    %c0_17 = arith.constant 0 : index
    %c0_18 = arith.constant 0 : index
    %10 = vector.load %arg4[%c0_15, %c0_16, %c0_17, %c0_18] : memref<6x4x1x8xf32, #tpu.memory_space<vmem>>, vector<1x4x1x8xf32>
    %11 = vector.shape_cast %10 : vector<1x4x1x8xf32> to vector<4x1x8xf32>
    %c1_19 = arith.constant 1 : index
    %c0_20 = arith.constant 0 : index
    %c0_21 = arith.constant 0 : index
    %c0_22 = arith.constant 0 : index
    %12 = vector.load %arg4[%c1_19, %c0_20, %c0_21, %c0_22] : memref<6x4x1x8xf32, #tpu.memory_space<vmem>>, vector<1x4x1x8xf32>
    %13 = vector.shape_cast %12 : vector<1x4x1x8xf32> to vector<4x1x8xf32>
    %c2_23 = arith.constant 2 : index
    %c0_24 = arith.constant 0 : index
    %c0_25 = arith.constant 0 : index
    %c0_26 = arith.constant 0 : index
    %14 = vector.load %arg4[%c2_23, %c0_24, %c0_25, %c0_26] : memref<6x4x1x8xf32, #tpu.memory_space<vmem>>, vector<1x4x1x8xf32>
    %15 = vector.shape_cast %14 : vector<1x4x1x8xf32> to vector<4x1x8xf32>
    %c0_27 = arith.constant 0 : index
    %c0_28 = arith.constant 0 : index
    %c0_29 = arith.constant 0 : index
    %c0_30 = arith.constant 0 : index
    %16 = vector.load %arg5[%c0_27, %c0_28, %c0_29, %c0_30] : memref<2x4x8x32xf32, #tpu.memory_space<vmem>>, vector<1x4x8x32xf32>
    %17 = vector.shape_cast %16 : vector<1x4x8x32xf32> to vector<4x8x32xf32>
    %c0_31 = arith.constant 0 : index
    %c0_32 = arith.constant 0 : index
    %c0_33 = arith.constant 0 : index
    %18 = vector.load %arg8[%c0_31, %c0_32, %c0_33] : memref<2x6x32xf32, #tpu.memory_space<vmem>>, vector<1x6x32xf32>
    %19 = vector.shape_cast %18 : vector<1x6x32xf32> to vector<6x32xf32>
    %20 = vector.extract_strided_slice %19 {offsets = [0, 0], sizes = [1, 32], strides = [1, 1]} : vector<6x32xf32> to vector<1x32xf32>
    %21 = vector.extract_strided_slice %19 {offsets = [1, 0], sizes = [1, 32], strides = [1, 1]} : vector<6x32xf32> to vector<1x32xf32>
    %22 = vector.extract_strided_slice %19 {offsets = [2, 0], sizes = [1, 32], strides = [1, 1]} : vector<6x32xf32> to vector<1x32xf32>
    %23 = vector.extract_strided_slice %19 {offsets = [3, 0], sizes = [1, 32], strides = [1, 1]} : vector<6x32xf32> to vector<1x32xf32>
    %24 = vector.extract_strided_slice %19 {offsets = [4, 0], sizes = [1, 32], strides = [1, 1]} : vector<6x32xf32> to vector<1x32xf32>
    %25 = vector.extract_strided_slice %19 {offsets = [5, 0], sizes = [1, 32], strides = [1, 1]} : vector<6x32xf32> to vector<1x32xf32>
    %c0_34 = arith.constant 0 : index
    %c0_35 = arith.constant 0 : index
    %c0_36 = arith.constant 0 : index
    %26 = vector.load %arg9[%c0_34, %c0_35, %c0_36] : memref<2x1x64xf32, #tpu.memory_space<vmem>>, vector<1x1x64xf32>
    %27 = vector.shape_cast %26 : vector<1x1x64xf32> to vector<1x64xf32>
    %28 = arith.addf %1, %3 : vector<8x32xf32>
    %29 = vector.shape_cast %28 : vector<8x32xf32> to vector<1x8x32xf32>
    %30 = vector.shape_cast %29 : vector<1x8x32xf32> to vector<1x8x32xf32>
    %31 = vector.broadcast %30 : vector<1x8x32xf32> to vector<4x8x32xf32>
    %32 = vector.shape_cast %1 : vector<8x32xf32> to vector<1x8x32xf32>
    %33 = vector.shape_cast %32 : vector<1x8x32xf32> to vector<1x8x32xf32>
    %34 = vector.broadcast %33 : vector<1x8x32xf32> to vector<4x8x32xf32>
    "tpu.trace_start"() <{level = 10 : i32, message = "hsd,hdk->hsk"}> : () -> ()
    %cst = arith.constant dense<0.000000e+00> : vector<4x8x8xf32>
    %35 = tpu.matmul %31, %5, %cst {dimension_numbers = #tpu.dot_dimension_numbers<[2], [1], [1], [2], [0, 0, 0, 1, 1, 2], [0], [0]>} : vector<4x8x32xf32>, vector<4x32x8xf32>, vector<4x8x8xf32> -> vector<4x8x8xf32>
    "tpu.trace_stop"() : () -> ()
    %36 = vector.broadcast %11 : vector<4x1x8xf32> to vector<4x8x8xf32>
    %37 = arith.addf %35, %36 : vector<4x8x8xf32>
    "tpu.trace_start"() <{level = 10 : i32, message = "hsd,hdk->hsk"}> : () -> ()
    %cst_37 = arith.constant dense<0.000000e+00> : vector<4x8x8xf32>
    %38 = tpu.matmul %31, %7, %cst_37 {dimension_numbers = #tpu.dot_dimension_numbers<[2], [1], [1], [2], [0, 0, 0, 1, 1, 2], [0], [0]>} : vector<4x8x32xf32>, vector<4x32x8xf32>, vector<4x8x8xf32> -> vector<4x8x8xf32>
    "tpu.trace_stop"() : () -> ()
    %39 = vector.broadcast %13 : vector<4x1x8xf32> to vector<4x8x8xf32>
    %40 = arith.addf %38, %39 : vector<4x8x8xf32>
    "tpu.trace_start"() <{level = 10 : i32, message = "hsd,hdk->hsk"}> : () -> ()
    %cst_38 = arith.constant dense<0.000000e+00> : vector<4x8x8xf32>
    %41 = tpu.matmul %34, %9, %cst_38 {dimension_numbers = #tpu.dot_dimension_numbers<[2], [1], [1], [2], [0, 0, 0, 1, 1, 2], [0], [0]>} : vector<4x8x32xf32>, vector<4x32x8xf32>, vector<4x8x8xf32> -> vector<4x8x8xf32>
    "tpu.trace_stop"() : () -> ()
    %42 = vector.broadcast %15 : vector<4x1x8xf32> to vector<4x8x8xf32>
    %43 = arith.addf %41, %42 : vector<4x8x8xf32>
    "tpu.trace_start"() <{level = 10 : i32, message = "hsk,htk->hst"}> : () -> ()
    %cst_39 = arith.constant dense<0.000000e+00> : vector<4x8x8xf32>
    %44 = tpu.matmul %37, %40, %cst_39 {dimension_numbers = #tpu.dot_dimension_numbers<[2], [2], [1], [1], [0, 0, 0, 1, 1, 1], [0], [0]>} : vector<4x8x8xf32>, vector<4x8x8xf32>, vector<4x8x8xf32> -> vector<4x8x8xf32>
    "tpu.trace_stop"() : () -> ()
    %cst_40 = arith.constant 0.353553385 : f32
    %45 = vector.broadcast %cst_40 : f32 to vector<4x8x8xf32>
    %46 = arith.mulf %44, %45 : vector<4x8x8xf32>
    %cst_41 = arith.constant dense<0xFF800000> : vector<4x8xf32>
    %47 = vector.multi_reduction <maximumf>, %46, %cst_41 [2] : vector<4x8x8xf32> to vector<4x8xf32>
    %48 = vector.shape_cast %47 : vector<4x8xf32> to vector<4x8x1xf32>
    %49 = vector.broadcast %48 : vector<4x8x1xf32> to vector<4x8x8xf32>
    %50 = arith.subf %46, %49 : vector<4x8x8xf32>
    %51 = math.exp %50 : vector<4x8x8xf32>
    %cst_42 = arith.constant dense<0.000000e+00> : vector<4x8xf32>
    %52 = vector.multi_reduction <add>, %51, %cst_42 [2] : vector<4x8x8xf32> to vector<4x8xf32>
    %53 = vector.shape_cast %52 : vector<4x8xf32> to vector<4x8x1xf32>
    %54 = tpu.reciprocal %53 {approx = true} : vector<4x8x1xf32> -> vector<4x8x1xf32>
    %55 = vector.broadcast %54 : vector<4x8x1xf32> to vector<4x8x8xf32>
    %56 = arith.mulf %51, %55 : vector<4x8x8xf32>
    "tpu.trace_start"() <{level = 10 : i32, message = "hst,htk->hsk"}> : () -> ()
    %cst_43 = arith.constant dense<0.000000e+00> : vector<4x8x8xf32>
    %57 = tpu.matmul %56, %43, %cst_43 {dimension_numbers = #tpu.dot_dimension_numbers<[2], [1], [1], [2], [0, 0, 0, 1, 1, 2], [0], [0]>} : vector<4x8x8xf32>, vector<4x8x8xf32>, vector<4x8x8xf32> -> vector<4x8x8xf32>
    "tpu.trace_stop"() : () -> ()
    "tpu.trace_start"() <{level = 10 : i32, message = "hsk,hkd->hsd"}> : () -> ()
    %cst_44 = arith.constant dense<0.000000e+00> : vector<4x8x32xf32>
    %58 = tpu.matmul %57, %17, %cst_44 {dimension_numbers = #tpu.dot_dimension_numbers<[2], [1], [1], [2], [0, 0, 0, 1, 1, 2], [0], [0]>} : vector<4x8x8xf32>, vector<4x8x32xf32>, vector<4x8x32xf32> -> vector<4x8x32xf32>
    "tpu.trace_stop"() : () -> ()
    %cst_45 = arith.constant dense<0.000000e+00> : vector<8x32xf32>
    %59 = vector.multi_reduction <add>, %58, %cst_45 [0] : vector<4x8x32xf32> to vector<8x32xf32>
    %60 = vector.broadcast %20 : vector<1x32xf32> to vector<8x32xf32>
    %61 = arith.addf %59, %60 : vector<8x32xf32>
    %62 = arith.addf %1, %61 : vector<8x32xf32>
    %cst_46 = arith.constant dense<0.000000e+00> : vector<8xf32>
    %63 = vector.multi_reduction <add>, %62, %cst_46 [1] : vector<8x32xf32> to vector<8xf32>
    %64 = vector.shape_cast %63 : vector<8xf32> to vector<8x1xf32>
    %cst_47 = arith.constant 3.200000e+01 : f32
    %65 = vector.broadcast %cst_47 : f32 to vector<8x1xf32>
    %66 = arith.divf %64, %65 : vector<8x1xf32>
    %67 = vector.broadcast %66 : vector<8x1xf32> to vector<8x32xf32>
    %68 = arith.subf %62, %67 : vector<8x32xf32>
    %69 = arith.mulf %68, %68 : vector<8x32xf32>
    %cst_48 = arith.constant dense<0.000000e+00> : vector<8xf32>
    %70 = vector.multi_reduction <add>, %69, %cst_48 [1] : vector<8x32xf32> to vector<8xf32>
    %71 = vector.shape_cast %70 : vector<8xf32> to vector<8x1xf32>
    %cst_49 = arith.constant 3.200000e+01 : f32
    %72 = vector.broadcast %cst_49 : f32 to vector<8x1xf32>
    %73 = arith.divf %71, %72 : vector<8x1xf32>
    %74 = vector.broadcast %66 : vector<8x1xf32> to vector<8x32xf32>
    %75 = arith.subf %62, %74 : vector<8x32xf32>
    %cst_50 = arith.constant 9.99999974E-6 : f32
    %76 = vector.broadcast %cst_50 : f32 to vector<8x1xf32>
    %77 = arith.addf %73, %76 : vector<8x1xf32>
    %78 = math.rsqrt %77 : vector<8x1xf32>
    %79 = vector.broadcast %78 : vector<8x1xf32> to vector<8x32xf32>
    %80 = arith.mulf %75, %79 : vector<8x32xf32>
    %81 = vector.broadcast %21 : vector<1x32xf32> to vector<8x32xf32>
    %82 = arith.mulf %80, %81 : vector<8x32xf32>
    %83 = vector.broadcast %22 : vector<1x32xf32> to vector<8x32xf32>
    %84 = arith.addf %82, %83 : vector<8x32xf32>
    %c0_51 = arith.constant 0 : index
    %c0_52 = arith.constant 0 : index
    %c0_53 = arith.constant 0 : index
    %85 = vector.load %arg6[%c0_51, %c0_52, %c0_53] : memref<2x32x64xf32, #tpu.memory_space<vmem>>, vector<1x32x64xf32>
    %86 = vector.shape_cast %85 : vector<1x32x64xf32> to vector<32x64xf32>
    %cst_54 = arith.constant dense<0.000000e+00> : vector<8x64xf32>
    %87 = tpu.matmul %84, %86, %cst_54 {dimension_numbers = #tpu.dot_dimension_numbers<[1], [0], [0], [1], [0, 0, 1, 1], [], []>} : vector<8x32xf32>, vector<32x64xf32>, vector<8x64xf32> -> vector<8x64xf32>
    %88 = vector.broadcast %27 : vector<1x64xf32> to vector<8x64xf32>
    %89 = arith.addf %87, %88 : vector<8x64xf32>
    %cst_55 = arith.constant 0.000000e+00 : f32
    %90 = vector.broadcast %cst_55 : f32 to vector<8x64xf32>
    %91 = arith.maximumf %89, %90 : vector<8x64xf32>
    %c0_56 = arith.constant 0 : index
    %c0_57 = arith.constant 0 : index
    %c0_58 = arith.constant 0 : index
    %92 = vector.load %arg7[%c0_56, %c0_57, %c0_58] : memref<2x64x32xf32, #tpu.memory_space<vmem>>, vector<1x64x32xf32>
    %93 = vector.shape_cast %92 : vector<1x64x32xf32> to vector<64x32xf32>
    %cst_59 = arith.constant dense<0.000000e+00> : vector<8x32xf32>
    %94 = tpu.matmul %91, %93, %cst_59 {dimension_numbers = #tpu.dot_dimension_numbers<[1], [0], [0], [1], [0, 0, 1, 1], [], []>} : vector<8x64xf32>, vector<64x32xf32>, vector<8x32xf32> -> vector<8x32xf32>
    %95 = vector.broadcast %23 : vector<1x32xf32> to vector<8x32xf32>
    %96 = arith.addf %94, %95 : vector<8x32xf32>
    %97 = arith.addf %84, %96 : vector<8x32xf32>
    %cst_60 = arith.constant dense<0.000000e+00> : vector<8xf32>
    %98 = vector.multi_reduction <add>, %97, %cst_60 [1] : vector<8x32xf32> to vector<8xf32>
    %99 = vector.shape_cast %98 : vector<8xf32> to vector<8x1xf32>
    %cst_61 = arith.constant 3.200000e+01 : f32
    %100 = vector.broadcast %cst_61 : f32 to vector<8x1xf32>
    %101 = arith.divf %99, %100 : vector<8x1xf32>
    %102 = vector.broadcast %101 : vector<8x1xf32> to vector<8x32xf32>
    %103 = arith.subf %97, %102 : vector<8x32xf32>
    %104 = arith.mulf %103, %103 : vector<8x32xf32>
    %cst_62 = arith.constant dense<0.000000e+00> : vector<8xf32>
    %105 = vector.multi_reduction <add>, %104, %cst_62 [1] : vector<8x32xf32> to vector<8xf32>
    %106 = vector.shape_cast %105 : vector<8xf32> to vector<8x1xf32>
    %cst_63 = arith.constant 3.200000e+01 : f32
    %107 = vector.broadcast %cst_63 : f32 to vector<8x1xf32>
    %108 = arith.divf %106, %107 : vector<8x1xf32>
    %109 = vector.broadcast %101 : vector<8x1xf32> to vector<8x32xf32>
    %110 = arith.subf %97, %109 : vector<8x32xf32>
    %cst_64 = arith.constant 9.99999974E-6 : f32
    %111 = vector.broadcast %cst_64 : f32 to vector<8x1xf32>
    %112 = arith.addf %108, %111 : vector<8x1xf32>
    %113 = math.rsqrt %112 : vector<8x1xf32>
    %114 = vector.broadcast %113 : vector<8x1xf32> to vector<8x32xf32>
    %115 = arith.mulf %110, %114 : vector<8x32xf32>
    %116 = vector.broadcast %24 : vector<1x32xf32> to vector<8x32xf32>
    %117 = arith.mulf %115, %116 : vector<8x32xf32>
    %118 = vector.broadcast %25 : vector<1x32xf32> to vector<8x32xf32>
    %119 = arith.addf %117, %118 : vector<8x32xf32>
    %c3 = arith.constant 3 : index
    %c0_65 = arith.constant 0 : index
    %c0_66 = arith.constant 0 : index
    %c0_67 = arith.constant 0 : index
    %120 = vector.load %arg3[%c3, %c0_65, %c0_66, %c0_67] : memref<6x4x32x8xf32, #tpu.memory_space<vmem>>, vector<1x4x32x8xf32>
    %121 = vector.shape_cast %120 : vector<1x4x32x8xf32> to vector<4x32x8xf32>
    %c4 = arith.constant 4 : index
    %c0_68 = arith.constant 0 : index
    %c0_69 = arith.constant 0 : index
    %c0_70 = arith.constant 0 : index
    %122 = vector.load %arg3[%c4, %c0_68, %c0_69, %c0_70] : memref<6x4x32x8xf32, #tpu.memory_space<vmem>>, vector<1x4x32x8xf32>
    %123 = vector.shape_cast %122 : vector<1x4x32x8xf32> to vector<4x32x8xf32>
    %c5 = arith.constant 5 : index
    %c0_71 = arith.constant 0 : index
    %c0_72 = arith.constant 0 : index
    %c0_73 = arith.constant 0 : index
    %124 = vector.load %arg3[%c5, %c0_71, %c0_72, %c0_73] : memref<6x4x32x8xf32, #tpu.memory_space<vmem>>, vector<1x4x32x8xf32>
    %125 = vector.shape_cast %124 : vector<1x4x32x8xf32> to vector<4x32x8xf32>
    %c3_74 = arith.constant 3 : index
    %c0_75 = arith.constant 0 : index
    %c0_76 = arith.constant 0 : index
    %c0_77 = arith.constant 0 : index
    %126 = vector.load %arg4[%c3_74, %c0_75, %c0_76, %c0_77] : memref<6x4x1x8xf32, #tpu.memory_space<vmem>>, vector<1x4x1x8xf32>
    %127 = vector.shape_cast %126 : vector<1x4x1x8xf32> to vector<4x1x8xf32>
    %c4_78 = arith.constant 4 : index
    %c0_79 = arith.constant 0 : index
    %c0_80 = arith.constant 0 : index
    %c0_81 = arith.constant 0 : index
    %128 = vector.load %arg4[%c4_78, %c0_79, %c0_80, %c0_81] : memref<6x4x1x8xf32, #tpu.memory_space<vmem>>, vector<1x4x1x8xf32>
    %129 = vector.shape_cast %128 : vector<1x4x1x8xf32> to vector<4x1x8xf32>
    %c5_82 = arith.constant 5 : index
    %c0_83 = arith.constant 0 : index
    %c0_84 = arith.constant 0 : index
    %c0_85 = arith.constant 0 : index
    %130 = vector.load %arg4[%c5_82, %c0_83, %c0_84, %c0_85] : memref<6x4x1x8xf32, #tpu.memory_space<vmem>>, vector<1x4x1x8xf32>
    %131 = vector.shape_cast %130 : vector<1x4x1x8xf32> to vector<4x1x8xf32>
    %c1_86 = arith.constant 1 : index
    %c0_87 = arith.constant 0 : index
    %c0_88 = arith.constant 0 : index
    %c0_89 = arith.constant 0 : index
    %132 = vector.load %arg5[%c1_86, %c0_87, %c0_88, %c0_89] : memref<2x4x8x32xf32, #tpu.memory_space<vmem>>, vector<1x4x8x32xf32>
    %133 = vector.shape_cast %132 : vector<1x4x8x32xf32> to vector<4x8x32xf32>
    %c1_90 = arith.constant 1 : index
    %c0_91 = arith.constant 0 : index
    %c0_92 = arith.constant 0 : index
    %134 = vector.load %arg8[%c1_90, %c0_91, %c0_92] : memref<2x6x32xf32, #tpu.memory_space<vmem>>, vector<1x6x32xf32>
    %135 = vector.shape_cast %134 : vector<1x6x32xf32> to vector<6x32xf32>
    %136 = vector.extract_strided_slice %135 {offsets = [0, 0], sizes = [1, 32], strides = [1, 1]} : vector<6x32xf32> to vector<1x32xf32>
    %137 = vector.extract_strided_slice %135 {offsets = [1, 0], sizes = [1, 32], strides = [1, 1]} : vector<6x32xf32> to vector<1x32xf32>
    %138 = vector.extract_strided_slice %135 {offsets = [2, 0], sizes = [1, 32], strides = [1, 1]} : vector<6x32xf32> to vector<1x32xf32>
    %139 = vector.extract_strided_slice %135 {offsets = [3, 0], sizes = [1, 32], strides = [1, 1]} : vector<6x32xf32> to vector<1x32xf32>
    %140 = vector.extract_strided_slice %135 {offsets = [4, 0], sizes = [1, 32], strides = [1, 1]} : vector<6x32xf32> to vector<1x32xf32>
    %141 = vector.extract_strided_slice %135 {offsets = [5, 0], sizes = [1, 32], strides = [1, 1]} : vector<6x32xf32> to vector<1x32xf32>
    %c1_93 = arith.constant 1 : index
    %c0_94 = arith.constant 0 : index
    %c0_95 = arith.constant 0 : index
    %142 = vector.load %arg9[%c1_93, %c0_94, %c0_95] : memref<2x1x64xf32, #tpu.memory_space<vmem>>, vector<1x1x64xf32>
    %143 = vector.shape_cast %142 : vector<1x1x64xf32> to vector<1x64xf32>
    %144 = arith.addf %119, %3 : vector<8x32xf32>
    %145 = vector.shape_cast %144 : vector<8x32xf32> to vector<1x8x32xf32>
    %146 = vector.shape_cast %145 : vector<1x8x32xf32> to vector<1x8x32xf32>
    %147 = vector.broadcast %146 : vector<1x8x32xf32> to vector<4x8x32xf32>
    %148 = vector.shape_cast %119 : vector<8x32xf32> to vector<1x8x32xf32>
    %149 = vector.shape_cast %148 : vector<1x8x32xf32> to vector<1x8x32xf32>
    %150 = vector.broadcast %149 : vector<1x8x32xf32> to vector<4x8x32xf32>
    "tpu.trace_start"() <{level = 10 : i32, message = "hsd,hdk->hsk"}> : () -> ()
    %cst_96 = arith.constant dense<0.000000e+00> : vector<4x8x8xf32>
    %151 = tpu.matmul %147, %121, %cst_96 {dimension_numbers = #tpu.dot_dimension_numbers<[2], [1], [1], [2], [0, 0, 0, 1, 1, 2], [0], [0]>} : vector<4x8x32xf32>, vector<4x32x8xf32>, vector<4x8x8xf32> -> vector<4x8x8xf32>
    "tpu.trace_stop"() : () -> ()
    %152 = vector.broadcast %127 : vector<4x1x8xf32> to vector<4x8x8xf32>
    %153 = arith.addf %151, %152 : vector<4x8x8xf32>
    "tpu.trace_start"() <{level = 10 : i32, message = "hsd,hdk->hsk"}> : () -> ()
    %cst_97 = arith.constant dense<0.000000e+00> : vector<4x8x8xf32>
    %154 = tpu.matmul %147, %123, %cst_97 {dimension_numbers = #tpu.dot_dimension_numbers<[2], [1], [1], [2], [0, 0, 0, 1, 1, 2], [0], [0]>} : vector<4x8x32xf32>, vector<4x32x8xf32>, vector<4x8x8xf32> -> vector<4x8x8xf32>
    "tpu.trace_stop"() : () -> ()
    %155 = vector.broadcast %129 : vector<4x1x8xf32> to vector<4x8x8xf32>
    %156 = arith.addf %154, %155 : vector<4x8x8xf32>
    "tpu.trace_start"() <{level = 10 : i32, message = "hsd,hdk->hsk"}> : () -> ()
    %cst_98 = arith.constant dense<0.000000e+00> : vector<4x8x8xf32>
    %157 = tpu.matmul %150, %125, %cst_98 {dimension_numbers = #tpu.dot_dimension_numbers<[2], [1], [1], [2], [0, 0, 0, 1, 1, 2], [0], [0]>} : vector<4x8x32xf32>, vector<4x32x8xf32>, vector<4x8x8xf32> -> vector<4x8x8xf32>
    "tpu.trace_stop"() : () -> ()
    %158 = vector.broadcast %131 : vector<4x1x8xf32> to vector<4x8x8xf32>
    %159 = arith.addf %157, %158 : vector<4x8x8xf32>
    "tpu.trace_start"() <{level = 10 : i32, message = "hsk,htk->hst"}> : () -> ()
    %cst_99 = arith.constant dense<0.000000e+00> : vector<4x8x8xf32>
    %160 = tpu.matmul %153, %156, %cst_99 {dimension_numbers = #tpu.dot_dimension_numbers<[2], [2], [1], [1], [0, 0, 0, 1, 1, 1], [0], [0]>} : vector<4x8x8xf32>, vector<4x8x8xf32>, vector<4x8x8xf32> -> vector<4x8x8xf32>
    "tpu.trace_stop"() : () -> ()
    %cst_100 = arith.constant 0.353553385 : f32
    %161 = vector.broadcast %cst_100 : f32 to vector<4x8x8xf32>
    %162 = arith.mulf %160, %161 : vector<4x8x8xf32>
    %cst_101 = arith.constant dense<0xFF800000> : vector<4x8xf32>
    %163 = vector.multi_reduction <maximumf>, %162, %cst_101 [2] : vector<4x8x8xf32> to vector<4x8xf32>
    %164 = vector.shape_cast %163 : vector<4x8xf32> to vector<4x8x1xf32>
    %165 = vector.broadcast %164 : vector<4x8x1xf32> to vector<4x8x8xf32>
    %166 = arith.subf %162, %165 : vector<4x8x8xf32>
    %167 = math.exp %166 : vector<4x8x8xf32>
    %cst_102 = arith.constant dense<0.000000e+00> : vector<4x8xf32>
    %168 = vector.multi_reduction <add>, %167, %cst_102 [2] : vector<4x8x8xf32> to vector<4x8xf32>
    %169 = vector.shape_cast %168 : vector<4x8xf32> to vector<4x8x1xf32>
    %170 = tpu.reciprocal %169 {approx = true} : vector<4x8x1xf32> -> vector<4x8x1xf32>
    %171 = vector.broadcast %170 : vector<4x8x1xf32> to vector<4x8x8xf32>
    %172 = arith.mulf %167, %171 : vector<4x8x8xf32>
    "tpu.trace_start"() <{level = 10 : i32, message = "hst,htk->hsk"}> : () -> ()
    %cst_103 = arith.constant dense<0.000000e+00> : vector<4x8x8xf32>
    %173 = tpu.matmul %172, %159, %cst_103 {dimension_numbers = #tpu.dot_dimension_numbers<[2], [1], [1], [2], [0, 0, 0, 1, 1, 2], [0], [0]>} : vector<4x8x8xf32>, vector<4x8x8xf32>, vector<4x8x8xf32> -> vector<4x8x8xf32>
    "tpu.trace_stop"() : () -> ()
    "tpu.trace_start"() <{level = 10 : i32, message = "hsk,hkd->hsd"}> : () -> ()
    %cst_104 = arith.constant dense<0.000000e+00> : vector<4x8x32xf32>
    %174 = tpu.matmul %173, %133, %cst_104 {dimension_numbers = #tpu.dot_dimension_numbers<[2], [1], [1], [2], [0, 0, 0, 1, 1, 2], [0], [0]>} : vector<4x8x8xf32>, vector<4x8x32xf32>, vector<4x8x32xf32> -> vector<4x8x32xf32>
    "tpu.trace_stop"() : () -> ()
    %cst_105 = arith.constant dense<0.000000e+00> : vector<8x32xf32>
    %175 = vector.multi_reduction <add>, %174, %cst_105 [0] : vector<4x8x32xf32> to vector<8x32xf32>
    %176 = vector.broadcast %136 : vector<1x32xf32> to vector<8x32xf32>
    %177 = arith.addf %175, %176 : vector<8x32xf32>
    %178 = arith.addf %119, %177 : vector<8x32xf32>
    %cst_106 = arith.constant dense<0.000000e+00> : vector<8xf32>
    %179 = vector.multi_reduction <add>, %178, %cst_106 [1] : vector<8x32xf32> to vector<8xf32>
    %180 = vector.shape_cast %179 : vector<8xf32> to vector<8x1xf32>
    %cst_107 = arith.constant 3.200000e+01 : f32
    %181 = vector.broadcast %cst_107 : f32 to vector<8x1xf32>
    %182 = arith.divf %180, %181 : vector<8x1xf32>
    %183 = vector.broadcast %182 : vector<8x1xf32> to vector<8x32xf32>
    %184 = arith.subf %178, %183 : vector<8x32xf32>
    %185 = arith.mulf %184, %184 : vector<8x32xf32>
    %cst_108 = arith.constant dense<0.000000e+00> : vector<8xf32>
    %186 = vector.multi_reduction <add>, %185, %cst_108 [1] : vector<8x32xf32> to vector<8xf32>
    %187 = vector.shape_cast %186 : vector<8xf32> to vector<8x1xf32>
    %cst_109 = arith.constant 3.200000e+01 : f32
    %188 = vector.broadcast %cst_109 : f32 to vector<8x1xf32>
    %189 = arith.divf %187, %188 : vector<8x1xf32>
    %190 = vector.broadcast %182 : vector<8x1xf32> to vector<8x32xf32>
    %191 = arith.subf %178, %190 : vector<8x32xf32>
    %cst_110 = arith.constant 9.99999974E-6 : f32
    %192 = vector.broadcast %cst_110 : f32 to vector<8x1xf32>
    %193 = arith.addf %189, %192 : vector<8x1xf32>
    %194 = math.rsqrt %193 : vector<8x1xf32>
    %195 = vector.broadcast %194 : vector<8x1xf32> to vector<8x32xf32>
    %196 = arith.mulf %191, %195 : vector<8x32xf32>
    %197 = vector.broadcast %137 : vector<1x32xf32> to vector<8x32xf32>
    %198 = arith.mulf %196, %197 : vector<8x32xf32>
    %199 = vector.broadcast %138 : vector<1x32xf32> to vector<8x32xf32>
    %200 = arith.addf %198, %199 : vector<8x32xf32>
    %c1_111 = arith.constant 1 : index
    %c0_112 = arith.constant 0 : index
    %c0_113 = arith.constant 0 : index
    %201 = vector.load %arg6[%c1_111, %c0_112, %c0_113] : memref<2x32x64xf32, #tpu.memory_space<vmem>>, vector<1x32x64xf32>
    %202 = vector.shape_cast %201 : vector<1x32x64xf32> to vector<32x64xf32>
    %cst_114 = arith.constant dense<0.000000e+00> : vector<8x64xf32>
    %203 = tpu.matmul %200, %202, %cst_114 {dimension_numbers = #tpu.dot_dimension_numbers<[1], [0], [0], [1], [0, 0, 1, 1], [], []>} : vector<8x32xf32>, vector<32x64xf32>, vector<8x64xf32> -> vector<8x64xf32>
    %204 = vector.broadcast %143 : vector<1x64xf32> to vector<8x64xf32>
    %205 = arith.addf %203, %204 : vector<8x64xf32>
    %cst_115 = arith.constant 0.000000e+00 : f32
    %206 = vector.broadcast %cst_115 : f32 to vector<8x64xf32>
    %207 = arith.maximumf %205, %206 : vector<8x64xf32>
    %c1_116 = arith.constant 1 : index
    %c0_117 = arith.constant 0 : index
    %c0_118 = arith.constant 0 : index
    %208 = vector.load %arg7[%c1_116, %c0_117, %c0_118] : memref<2x64x32xf32, #tpu.memory_space<vmem>>, vector<1x64x32xf32>
    %209 = vector.shape_cast %208 : vector<1x64x32xf32> to vector<64x32xf32>
    %cst_119 = arith.constant dense<0.000000e+00> : vector<8x32xf32>
    %210 = tpu.matmul %207, %209, %cst_119 {dimension_numbers = #tpu.dot_dimension_numbers<[1], [0], [0], [1], [0, 0, 1, 1], [], []>} : vector<8x64xf32>, vector<64x32xf32>, vector<8x32xf32> -> vector<8x32xf32>
    %211 = vector.broadcast %139 : vector<1x32xf32> to vector<8x32xf32>
    %212 = arith.addf %210, %211 : vector<8x32xf32>
    %213 = arith.addf %200, %212 : vector<8x32xf32>
    %cst_120 = arith.constant dense<0.000000e+00> : vector<8xf32>
    %214 = vector.multi_reduction <add>, %213, %cst_120 [1] : vector<8x32xf32> to vector<8xf32>
    %215 = vector.shape_cast %214 : vector<8xf32> to vector<8x1xf32>
    %cst_121 = arith.constant 3.200000e+01 : f32
    %216 = vector.broadcast %cst_121 : f32 to vector<8x1xf32>
    %217 = arith.divf %215, %216 : vector<8x1xf32>
    %218 = vector.broadcast %217 : vector<8x1xf32> to vector<8x32xf32>
    %219 = arith.subf %213, %218 : vector<8x32xf32>
    %220 = arith.mulf %219, %219 : vector<8x32xf32>
    %cst_122 = arith.constant dense<0.000000e+00> : vector<8xf32>
    %221 = vector.multi_reduction <add>, %220, %cst_122 [1] : vector<8x32xf32> to vector<8xf32>
    %222 = vector.shape_cast %221 : vector<8xf32> to vector<8x1xf32>
    %cst_123 = arith.constant 3.200000e+01 : f32
    %223 = vector.broadcast %cst_123 : f32 to vector<8x1xf32>
    %224 = arith.divf %222, %223 : vector<8x1xf32>
    %225 = vector.broadcast %217 : vector<8x1xf32> to vector<8x32xf32>
    %226 = arith.subf %213, %225 : vector<8x32xf32>
    %cst_124 = arith.constant 9.99999974E-6 : f32
    %227 = vector.broadcast %cst_124 : f32 to vector<8x1xf32>
    %228 = arith.addf %224, %227 : vector<8x1xf32>
    %229 = math.rsqrt %228 : vector<8x1xf32>
    %230 = vector.broadcast %229 : vector<8x1xf32> to vector<8x32xf32>
    %231 = arith.mulf %226, %230 : vector<8x32xf32>
    %232 = vector.broadcast %140 : vector<1x32xf32> to vector<8x32xf32>
    %233 = arith.mulf %231, %232 : vector<8x32xf32>
    %234 = vector.broadcast %141 : vector<1x32xf32> to vector<8x32xf32>
    %235 = arith.addf %233, %234 : vector<8x32xf32>
    %c0_125 = arith.constant 0 : index
    %c0_126 = arith.constant 0 : index
    %236 = vector.load %arg10[%c0_125, %c0_126] : memref<2x32xf32, #tpu.memory_space<vmem>>, vector<2x32xf32>
    %237 = vector.extract_strided_slice %236 {offsets = [0, 0], sizes = [1, 32], strides = [1, 1]} : vector<2x32xf32> to vector<1x32xf32>
    %238 = vector.extract_strided_slice %236 {offsets = [1, 0], sizes = [1, 32], strides = [1, 1]} : vector<2x32xf32> to vector<1x32xf32>
    %cst_127 = arith.constant dense<0.000000e+00> : vector<8xf32>
    %239 = vector.multi_reduction <add>, %235, %cst_127 [1] : vector<8x32xf32> to vector<8xf32>
    %240 = vector.shape_cast %239 : vector<8xf32> to vector<8x1xf32>
    %cst_128 = arith.constant 3.200000e+01 : f32
    %241 = vector.broadcast %cst_128 : f32 to vector<8x1xf32>
    %242 = arith.divf %240, %241 : vector<8x1xf32>
    %243 = vector.broadcast %242 : vector<8x1xf32> to vector<8x32xf32>
    %244 = arith.subf %235, %243 : vector<8x32xf32>
    %245 = arith.mulf %244, %244 : vector<8x32xf32>
    %cst_129 = arith.constant dense<0.000000e+00> : vector<8xf32>
    %246 = vector.multi_reduction <add>, %245, %cst_129 [1] : vector<8x32xf32> to vector<8xf32>
    %247 = vector.shape_cast %246 : vector<8xf32> to vector<8x1xf32>
    %cst_130 = arith.constant 3.200000e+01 : f32
    %248 = vector.broadcast %cst_130 : f32 to vector<8x1xf32>
    %249 = arith.divf %247, %248 : vector<8x1xf32>
    %250 = vector.broadcast %242 : vector<8x1xf32> to vector<8x32xf32>
    %251 = arith.subf %235, %250 : vector<8x32xf32>
    %cst_131 = arith.constant 9.99999974E-6 : f32
    %252 = vector.broadcast %cst_131 : f32 to vector<8x1xf32>
    %253 = arith.addf %249, %252 : vector<8x1xf32>
    %254 = math.rsqrt %253 : vector<8x1xf32>
    %255 = vector.broadcast %254 : vector<8x1xf32> to vector<8x32xf32>
    %256 = arith.mulf %251, %255 : vector<8x32xf32>
    %257 = vector.broadcast %237 : vector<1x32xf32> to vector<8x32xf32>
    %258 = arith.mulf %256, %257 : vector<8x32xf32>
    %259 = vector.broadcast %238 : vector<1x32xf32> to vector<8x32xf32>
    %260 = arith.addf %258, %259 : vector<8x32xf32>
    %c0_132 = arith.constant 0 : index
    %c0_133 = arith.constant 0 : index
    %c0_134 = arith.constant 0 : index
    %261 = vector.load %arg11[%c0_132, %c0_133, %c0_134] : memref<1x8x32xf32, #tpu.memory_space<vmem>>, vector<1x8x32xf32>
    %262 = vector.shape_cast %261 : vector<1x8x32xf32> to vector<8x32xf32>
    %263 = vector.shape_cast %260 : vector<8x32xf32> to vector<1x8x32xf32>
    tpu.vector_store %arg11[%c0_132, %c0_133, %c0_134], %263 {strides = array<i32>} : memref<1x8x32xf32, #tpu.memory_space<vmem>>, vector<1x8x32xf32>,
    return
  }
  func.func @transform_0(%arg0: i32) -> (i32, i32, i32) {
    %c0_i32 = arith.constant 0 : i32
    %c0_i32_0 = arith.constant 0 : i32
    %c0_i32_1 = arith.constant 0 : i32
    return %arg0, %c0_i32, %c0_i32_0 : i32, i32, i32
  }
  func.func @transform_1(%arg0: i32) -> (i32, i32, i32) {
    %c0_i32 = arith.constant 0 : i32
    %c0_i32_0 = arith.constant 0 : i32
    %c0_i32_1 = arith.constant 0 : i32
    return %arg0, %c0_i32, %c0_i32_0 : i32, i32, i32
  }
  func.func @transform_2(%arg0: i32) -> (i32, i32, i32, i32) {
    %c0_i32 = arith.constant 0 : i32
    %c0_i32_0 = arith.constant 0 : i32
    %c0_i32_1 = arith.constant 0 : i32
    %c0_i32_2 = arith.constant 0 : i32
    %c0_i32_3 = arith.constant 0 : i32
    return %c0_i32, %c0_i32_0, %c0_i32_1, %c0_i32_2 : i32, i32, i32, i32
  }
  func.func @transform_3(%arg0: i32) -> (i32, i32, i32, i32) {
    %c0_i32 = arith.constant 0 : i32
    %c0_i32_0 = arith.constant 0 : i32
    %c0_i32_1 = arith.constant 0 : i32
    %c0_i32_2 = arith.constant 0 : i32
    %c0_i32_3 = arith.constant 0 : i32
    return %c0_i32, %c0_i32_0, %c0_i32_1, %c0_i32_2 : i32, i32, i32, i32
  }
  func.func @transform_4(%arg0: i32) -> (i32, i32, i32, i32) {
    %c0_i32 = arith.constant 0 : i32
    %c0_i32_0 = arith.constant 0 : i32
    %c0_i32_1 = arith.constant 0 : i32
    %c0_i32_2 = arith.constant 0 : i32
    %c0_i32_3 = arith.constant 0 : i32
    return %c0_i32, %c0_i32_0, %c0_i32_1, %c0_i32_2 : i32, i32, i32, i32
  }
  func.func @transform_5(%arg0: i32) -> (i32, i32, i32) {
    %c0_i32 = arith.constant 0 : i32
    %c0_i32_0 = arith.constant 0 : i32
    %c0_i32_1 = arith.constant 0 : i32
    %c0_i32_2 = arith.constant 0 : i32
    return %c0_i32, %c0_i32_0, %c0_i32_1 : i32, i32, i32
  }
  func.func @transform_6(%arg0: i32) -> (i32, i32, i32) {
    %c0_i32 = arith.constant 0 : i32
    %c0_i32_0 = arith.constant 0 : i32
    %c0_i32_1 = arith.constant 0 : i32
    %c0_i32_2 = arith.constant 0 : i32
    return %c0_i32, %c0_i32_0, %c0_i32_1 : i32, i32, i32
  }
  func.func @transform_7(%arg0: i32) -> (i32, i32, i32) {
    %c0_i32 = arith.constant 0 : i32
    %c0_i32_0 = arith.constant 0 : i32
    %c0_i32_1 = arith.constant 0 : i32
    %c0_i32_2 = arith.constant 0 : i32
    return %c0_i32, %c0_i32_0, %c0_i32_1 : i32, i32, i32
  }
  func.func @transform_8(%arg0: i32) -> (i32, i32, i32) {
    %c0_i32 = arith.constant 0 : i32
    %c0_i32_0 = arith.constant 0 : i32
    %c0_i32_1 = arith.constant 0 : i32
    %c0_i32_2 = arith.constant 0 : i32
    return %c0_i32, %c0_i32_0, %c0_i32_1 : i32, i32, i32
  }
  func.func @transform_9(%arg0: i32) -> (i32, i32) {
    %c0_i32 = arith.constant 0 : i32
    %c0_i32_0 = arith.constant 0 : i32
    %c0_i32_1 = arith.constant 0 : i32
    return %c0_i32, %c0_i32_0 : i32, i32
  }
  func.func @transform_10(%arg0: i32) -> (i32, i32, i32) {
    %c0_i32 = arith.constant 0 : i32
    %c0_i32_0 = arith.constant 0 : i32
    %c0_i32_1 = arith.constant 0 : i32
    return %arg0, %c0_i32, %c0_i32_0 : i32, i32, i32
  }
}

</mosaic_0001>

<bundles_post_ra>
// kernel: tpu_custom_call.1
= control target key start
LH: loop header
LB: loop body
LE: loop exit
PB: predicated region body
PF: predicated region fallthrough
CT: control target
= control target key end

     0   :  { %15 = vsyncpa [#allocation3], 0  ;;  %s3262_s0 = inlined_call_operand.vmem [shape: f32[2,8,32], index: 0, kind: input, shape index: {}]   ;;  %s3263_s1 = inlined_call_operand.vmem [shape: f32[2,8,32], index: 1, kind: input, shape index: {}]   ;;  %s3264_s2 = inlined_call_operand.vmem [shape: f32[6,4,32,8], index: 2, kind: input, shape index: {}]   ;;  %s3265_s3 = inlined_call_operand.vmem [shape: f32[6,4,1,8], index: 3, kind: input, shape index: {}]   ;;  %s3266_s4 = inlined_call_operand.vmem [shape: f32[2,4,8,32], index: 4, kind: input, shape index: {}]   ;;  %s3267_s5 = inlined_call_operand.vmem [shape: f32[2,32,64], index: 5, kind: input, shape index: {}]   ;;  %s3268_s6 = inlined_call_operand.vmem [shape: f32[2,64,32], index: 6, kind: input, shape index: {}]   ;;  %s3269_s7 = inlined_call_operand.vmem [shape: f32[2,6,32], index: 7, kind: input, shape index: {}]   ;;  %s3270_s8 = inlined_call_operand.vmem [shape: f32[2,1,64], index: 8, kind: input, shape index: {}]   ;;  %s3271_s9 = inlined_call_operand.vmem [shape: f32[2,32], index: 9, kind: input, shape index: {}]   ;;  %s3272_s10 = inlined_call_operand.hbm [shape: f32[2,8,32], index: 10, kind: output, shape index: {}]  }
   0x1   :  { %17 = vsyncpa [#allocation3 + $0x1], 0  ;;  %s2555_s13 = smov 0   ;;  %s2557_s14 = smov 0  }
   0x2   :  { %s2559_s15 = smov 0   ;;  %s2561_s16 = smov 0  }
   0x3 LB: > { %3274 = sst [smem:[#allocation5_spill]] %s2493_s15  ;;  %s2576_s17 = sadd.s32 4294967295, %s2497_s16   ;;  %s2497_s16 = sphi %s2561_s16, %s3282_s16   ;;  %s2493_s15 = sphi %s2559_s15, %s3279_s15   ;;  %s2489_s14 = sphi %s2557_s14, %s3281_s14   ;;  %s2485_s13 = sphi %s2555_s13, %s3280_s13  }
   0x4   : > { %s2136_s18 = sadd.s32 4294967294, %s2497_s16   ;;  %s2580_s19 = sadd.s32 1, %s2497_s16  }
   0x5   : > { %s250_s20 = sadd.s32 1, %s2493_s15  ;;  %s247_s21 = ssub.s32 %s2497_s16, %s2580_s19 }
   0x6   : > { %p260_p0 = scmp.ne.s32.totalorder %s2493_s15, %s2489_s14  ;;  %p248_p1 = scmp.eq.s32.totalorder %s247_s21, 0 }
   0x7   : > { %p261_p2 = scmp.eq.s32.totalorder %s2576_s17, 1  ;;  %p266_p3 = scmp.ne.s32.totalorder %s2489_s14, %s2485_s13 }
   0x8   : > { %p267_p4 = scmp.eq.s32.totalorder %s2136_s18, 1  ;;  %p2139_p7 = scmp.ge.s32.totalorder %s2497_s16, 1 }
   0x9   : > { %s2591_s22 = scalar_select %p248_p1, %s2493_s15, %s250_s20  }
   0xa   : > { %p2593_p5 = por %p261_p2, %p260_p0  ;;  %p2597_p6 = por %p267_p4, %p266_p3 }
   0xb   : > { %3275 = sst [smem:[#allocation6_spill]] %s2591_s22  ;;  %p323_p8 = scmp.lt.s32.totalorder %s2497_s16, 3 }
   0xd   : > { %p324_p9 = pnand %p2139_p7, %p323_p8 }
   0xe   : > { %p364_p10 = scmp.lt.s32.totalorder (!%p324_p9), %s2576_s17, 1  ;;  %s361_s25 = sand.u32 (!%p324_p9), 1, %s2489_s14  }
   0xf   : > { %327 = sbr.rel (%p324_p9) target bundleno = 3528 (0xdc8), region = 60  ;;  %s2140_s26 = sshll.u32 (!%p324_p9), %s361_s25, 3 }
  0x10   : > { %s2322_s29 = sshll.u32 (!%p324_p9), %s2576_s17, 3  ;;  %s363_s15 = scalar_lea.vmem (!%p324_p9), [#allocation2], %s2140_s26 }
  0x11   : > { %s2062_s11 = sshll.u32 (!%p324_p9), %s363_s15, 4  ;;  %s2455_s26 = scalar_lea.hbm (!%p324_p9), %s3272_s10, 16  ;;  %s2063_s11 = int_to_ptr.vmem [resolvable:$true] %s2062_s11 }
  0x14   : > { %v377_v0 = vld [vmem:[%s3264_s2 + $0x18] sm:$0xff]  ;;  %v376_v4 = vld [vmem:[%s3264_s2 + $0x10] sm:$0xff]  ;;  %v375_v8 = vld [vmem:[%s3264_s2 + $0x8] sm:$0xff]  ;;  %s365_s12 = scalar_select %p364_p10, %s2576_s17, 1  ;;  %vm457_vm0 = vcmask 261120   ;;  %vm728_vm1 = vcmask 64512  }
  0x15   : > { %v385_v1 = vld [vmem:[%s3264_s2 + $0x58] sm:$0xff]  ;;  %473 = vmatpush.msra.mxu1 %v377_v0  ;;  %v384_v5 = vld [vmem:[%s3264_s2 + $0x50] sm:$0xff]  ;;  %v383_v9 = vld [vmem:[%s3264_s2 + $0x48] sm:$0xff]  ;;  %vm1148_vm6 = vcmask 523264   ;;  %s2050_s17 = scalar_lea.sflag [#allocation3], %s361_s25 }
  0x16   : > { %v389_v2 = vld [vmem:[%s3264_s2 + $0x78] sm:$0xff]  ;;  %513 = vmatpush.msra.mxu2 %v385_v1  ;;  %v388_v6 = vld [vmem:[%s3264_s2 + $0x70] sm:$0xff]  ;;  %v387_v10 = vld [vmem:[%s3264_s2 + $0x68] sm:$0xff]  ;;  %s2141_s18 = sshll.u32 %s365_s12, 3  ;;  %s2060_s12 = scalar_lea.hbm %s3272_s10, %s2322_s29 }
  0x17   : > { %v2146_v3 = vld [vmem:[%s3264_s2 + $0x98] sm:$0xff]  ;;  %533 = vmatpush.msra.mxu3 %v389_v2  ;;  %v2145_v7 = vld [vmem:[%s3264_s2 + $0x90] sm:$0xff]  ;;  %474 = vmatpush.msra.mxu1 %v376_v4  ;;  %v2144_v11 = vld [vmem:[%s3264_s2 + $0x88] sm:$0xff]  ;;  %s367_s28 = scalar_lea.vmem %s3262_s0, %s2141_s18  ;;  %s371_s30 = scalar_lea.vmem %s3263_s1, %s2141_s18 }
  0x18   : > { %565 = vmatpush.msra.mxu0 %v2146_v3  ;;  %514 = vmatpush.msra.mxu2 %v384_v5  ;;  %v374_v12 = vld [vmem:[%s3264_s2] sm:$0xff]  ;;  %v381_v19 = vld [vmem:[%s3264_s2 + $0x38] sm:$0xff]  ;;  %v380_v22 = vld [vmem:[%s3264_s2 + $0x30] sm:$0xff]  ;;  %s2064_s18 = sshll.u32 %s2060_s12, 4  ;;  %s2065_s18 = int_to_ptr.hbm [resolvable:$true] %s2064_s18 }
  0x19   : > { %534 = vmatpush.msra.mxu3 %v388_v6  ;;  %v382_v13 = vld [vmem:[%s3264_s2 + $0x40] sm:$0xff]  ;;  %475 = vmatpush.msra.mxu1 %v375_v8  ;;  %v2154_v20 = vld [vmem:[%s3264_s2 + $0xd8] sm:$0xff]  ;;  %v2153_v23 = vld [vmem:[%s3264_s2 + $0xd0] sm:$0xff]  ;;  %s2449_s20 = sshra.s32 %s2065_s18, 4  ;;  %s2450_s20 = int_to_ptr.hbm [resolvable:$true] %s2449_s20 }
  0x1a   : > { %566 = vmatpush.msra.mxu0 %v2145_v7  ;;  %515 = vmatpush.msra.mxu2 %v383_v9  ;;  %v386_v14 = vld [vmem:[%s3264_s2 + $0x60] sm:$0xff]  ;;  %v2158_v21 = vld [vmem:[%s3264_s2 + $0xf8] sm:$0xff]  ;;  %v2157_v24 = vld [vmem:[%s3264_s2 + $0xf0] sm:$0xff]  ;;  %s2451_s21 = scalar_lea.hbm %s2450_s20, 8  ;;  %p2456_p0 = scmp.lt.s32.totalorder %s2450_s20, %s3272_s10 }
  0x1b   : > { %v2143_v15 = vld [vmem:[%s3264_s2 + $0x80] sm:$0xff]  ;;  %535 = vmatpush.msra.mxu3 %v387_v10  ;;  %476 = vmatpush.msra.mxu1 %v374_v12  ;;  %v379_v25 = vld [vmem:[%s3264_s2 + $0x28] sm:$0xff]  ;;  %v2162_v28 = vld [vmem:[%s3264_s2 + $0x118] sm:$0xff]  ;;  %p2452_p11 = scmp.ne.s32.totalorder %s2450_s20, %s2451_s21  ;;  %p2457_p1 = scmp.lt.s32.totalorder %s2455_s26, %s2451_s21 }
  0x1c   : > { %567 = vmatpush.msra.mxu0 %v2144_v11  ;;  %v2659_v16 = vld [vmem:[%s367_s28] sm:$0xff]  ;;  %516 = vmatpush.msra.mxu2 %v382_v13  ;;  %v2152_v26 = vld [vmem:[%s3264_s2 + $0xc8] sm:$0xff]  ;;  %v2161_v29 = vld [vmem:[%s3264_s2 + $0x110] sm:$0xff] }
  0x1d   : > { %v2661_v17 = vld [vmem:[%s371_s30] sm:$0xff]  ;;  %536 = vmatpush.msra.mxu3 %v386_v14  ;;  %493 = vmatpush.msrb.mxu1 %v381_v19  ;;  %v2156_v27 = vld [vmem:[%s3264_s2 + $0xe8] sm:$0xff]  ;;  %v2150_v34 = vld [vmem:[%s3264_s2 + $0xb8] sm:$0xff]  ;;  %p2453_p12 = pnand %p2452_p11, %p2593_p5  ;;  %p2458_p2 = por %p2457_p1, %p2456_p0 }
  0x1e   : > { %v444_v18 = vadd.f32 %v2661_v17, %v2659_v16  ;;  %568 = vmatpush.msra.mxu0 %v2143_v15  ;;  %605 = vmatpush.msrb.mxu2 %v2154_v20  ;;  %v378_v30 = vld [vmem:[%s3264_s2 + $0x20] sm:$0xff]  ;;  %v2160_v33 = vld [vmem:[%s3264_s2 + $0x108] sm:$0xff]  ;;  %v2149_v36 = vld [vmem:[%s3264_s2 + $0xb0] sm:$0xff] }
  0x1f   : > { %625 = vmatpush.msrb.mxu3 %v2158_v21  ;;  %v2151_v31 = vld [vmem:[%s3264_s2 + $0xc0] sm:$0xff]  ;;  %494 = vmatpush.msrb.mxu1 %v380_v22  ;;  %v2148_v37 = vld [vmem:[%s3264_s2 + $0xa8] sm:$0xff]  ;;  %v2170_v39 = vld [vmem:[%s3264_s2 + $0x158] sm:$0xff]  ;;  %p2454_p13 = pneg %p2453_p12 }
  0x20   : > { %2183 = vmatmul.msk.f32.vlgmr.msra.gmra.mxu1 %vm457_vm0, %v444_v18  ;;  %2185 = vmatmul.msk.f32.vlgmr.msra.gmra.mxu2 %vm457_vm0, %v444_v18  ;;  %v2155_v32 = vld [vmem:[%s3264_s2 + $0xe0] sm:$0xff]  ;;  %v2174_v40 = vld [vmem:[%s3264_s2 + $0x178] sm:$0xff]  ;;  %v2169_v42 = vld [vmem:[%s3264_s2 + $0x150] sm:$0xff] }
  0x21   : > { %2186 = vmatmul.msk.f32.vlgmr.msra.gmra.mxu3 %vm457_vm0, %v444_v18  ;;  %2187 = vmatmul.msk.f32.vlgmr.msra.gmra.mxu0 %vm457_vm0, %v444_v18  ;;  %v2159_v35 = vld [vmem:[%s3264_s2 + $0x100] sm:$0xff]  ;;  %v2166_v41 = vld [vmem:[%s3264_s2 + $0x138] sm:$0xff]  ;;  %v2173_v43 = vld [vmem:[%s3264_s2 + $0x170] sm:$0xff]  ;;  %p2459_p3 = pnand %p2458_p2, %p2454_p13 }
  0x22   : > { %660 = vmatpush.msrb.mxu0 %v2162_v28  ;;  %606 = vmatpush.msrb.mxu2 %v2153_v23  ;;  %v2147_v38 = vld [vmem:[%s3264_s2 + $0xa0] sm:$0xff]  ;;  %v2165_v44 = vld [vmem:[%s3264_s2 + $0x130] sm:$0xff]  ;;  %v2168_v45 = vld [vmem:[%s3264_s2 + $0x148] sm:$0xff] }
  0x23   : > { %626 = vmatpush.msrb.mxu3 %v2157_v24  ;;  %495 = vmatpush.msrb.mxu1 %v379_v25  ;;  %v2172_v46 = vld [vmem:[%s3264_s2 + $0x168] sm:$0xff]  ;;  %v2167_v48 = vld [vmem:[%s3264_s2 + $0x140] sm:$0xff] }
  0x24   : > { %661 = vmatpush.msrb.mxu0 %v2161_v29  ;;  %607 = vmatpush.msrb.mxu2 %v2152_v26  ;;  %v2164_v47 = vld [vmem:[%s3264_s2 + $0x128] sm:$0xff]  ;;  %v2171_v49 = vld [vmem:[%s3264_s2 + $0x160] sm:$0xff] }
  0x25   : > { %627 = vmatpush.msrb.mxu3 %v2156_v27  ;;  %496 = vmatpush.msrb.mxu1 %v378_v30  ;;  %v2163_v50 = vld [vmem:[%s3264_s2 + $0x120] sm:$0xff]  ;;  %v2373_v60 = vld [vmem:[%s3265_s3 + $0x8] ss:$0 sm:$0xff]  ;;  %v2374_v14 = vld [vmem:[%s3265_s3 + $0x9] ss:$0 sm:$0xff] }
  0x26   : > { %662 = vmatpush.msrb.mxu0 %v2160_v33  ;;  %608 = vmatpush.msrb.mxu2 %v2151_v31  ;;  %v2366_v51 = vld [vmem:[%s3265_s3 + $0x4] ss:$0 sm:$0xff]  ;;  %v2365_v52 = vld [vmem:[%s3265_s3] ss:$0 sm:$0xff]  ;;  %v2370_v62 = vld [vmem:[%s3265_s3 + $0x6] ss:$0 sm:$0xff] }
  0x27   : > { %628 = vmatpush.msrb.mxu3 %v2155_v32  ;;  %585 = vmatpush.msra.mxu1 %v2150_v34  ;;  %v2371_v63 = vld [vmem:[%s3265_s3 + $0x7] ss:$0 sm:$0xff]  ;;  %v2372_v1 = vld [vmem:[%s3265_s3 + $0x5] ss:$0 sm:$0xff]  ;;  %v2367_v2 = vld [vmem:[%s3265_s3 + $0x2] ss:$0 sm:$0xff] }
  0x28   : > { %2184 = vmatmul.msk.f32.vlgmr.msrb.gmra.mxu1 %vm457_vm0, %v444_v18  ;;  %2189 = vmatmul.msk.f32.vlgmr.msrb.gmra.mxu2 %vm457_vm0, %v444_v18  ;;  %v2368_v3 = vld [vmem:[%s3265_s3 + $0x3] ss:$0 sm:$0xff]  ;;  %v2369_v4 = vld [vmem:[%s3265_s3 + $0x1] ss:$0 sm:$0xff]  ;;  %v2375_v19 = vld [vmem:[%s3265_s3 + $0xa] ss:$0 sm:$0xff] }
  0x29   : > { %2190 = vmatmul.msk.f32.vlgmr.msrb.gmra.mxu3 %vm457_vm0, %v444_v18  ;;  %663 = vmatpush.msrb.mxu0 %v2159_v35  ;;  %v2376_v20 = vld [vmem:[%s3265_s3 + $0xb] ss:$0 sm:$0xff] }
  0x2a   : > { %2191 = vmatmul.msk.f32.vlgmr.msrb.gmra.mxu0 %vm457_vm0, %v2659_v16  ;;  %586 = vmatpush.msra.mxu1 %v2149_v36 }
  0x2b   : > { %700 = vmatpush.msra.mxu2 %v2170_v39  ;;  %720 = vmatpush.msra.mxu3 %v2174_v40 }
  0x2c   : > { %587 = vmatpush.msra.mxu1 %v2148_v37 }
  0x2d   : > { %701 = vmatpush.msra.mxu2 %v2169_v42  ;;  %721 = vmatpush.msra.mxu3 %v2173_v43 }
  0x2e   : > { %588 = vmatpush.msra.mxu1 %v2147_v38 }
  0x2f   : > { %702 = vmatpush.msra.mxu2 %v2168_v45  ;;  %722 = vmatpush.msra.mxu3 %v2172_v46 }
  0x30   : > { %2188 = vmatmul.msk.f32.vlgmr.msra.gmra.mxu1 %vm457_vm0, %v444_v18 }
  0x31   : > { %680 = vmatpush.msrb.mxu1 %v2166_v41  ;;  %703 = vmatpush.msra.mxu2 %v2167_v48 }
  0x32   : > { %723 = vmatpush.msra.mxu3 %v2171_v49  ;;  %2193 = vmatmul.msk.f32.vlgmr.msra.gmra.mxu2 %vm457_vm0, %v2659_v16 }
  0x33   : > { %681 = vmatpush.msrb.mxu1 %v2165_v44  ;;  %2194 = vmatmul.msk.f32.vlgmr.msra.gmra.mxu3 %vm457_vm0, %v2659_v16 }
  0x35   : > { %682 = vmatpush.msrb.mxu1 %v2164_v47 }
  0x37   : > { %683 = vmatpush.msrb.mxu1 %v2163_v50 }
  0x38   : > { %2192 = vmatmul.msk.f32.vlgmr.msrb.gmra.mxu1 %vm457_vm0, %v2659_v16 }
  0x9d   : > { %v478_v53 = vpop.f32.mrf.mxu1 }
  0x9e   : > { %v570_v54 = vpop.f32.mrf.mxu0  ;;  %v479_v56 = vadd.f32 %v2365_v52, %v478_v53 }
  0x9f   : > { %v571_v55 = vadd.f32 %v2366_v51, %v570_v54 }
  0xa1   : > { %2195 = vmatpush.xpose.msk.msra.mxu0 %vm728_vm1, %v571_v55 }
  0xa3   : > { %v518_v57 = vpop.f32.mrf.mxu2 }
  0xa4   : > { %v538_v58 = vpop.f32.mrf.mxu3  ;;  %2196 = vmatmul.msk.f32.vlgmr.msra.gmra.mxu0 %vm728_vm1, %v479_v56  ;;  %v519_v11 = vadd.f32 %v2367_v2, %v518_v57 }
  0xa5   : > { %v498_v59 = vpop.f32.mrf.mxu1  ;;  %v539_v12 = vadd.f32 %v2368_v3, %v538_v58 }
  0xa6   : > { %v499_v13 = vadd.f32 %v2369_v4, %v498_v59 }
  0xa7   : > { %v665_v61 = vpop.f32.mrf.mxu0 }
  0xa8   : > { %v666_v0 = vadd.f32 %v2373_v60, %v665_v61 }
  0xaa   : > { %899 = vmatpush.msrb.mxu0 %v666_v0 }
  0xab   : > { %v610_v5 = vpop.f32.mrf.mxu2 }
  0xac   : > { %v630_v6 = vpop.f32.mrf.mxu3  ;;  %v611_v7 = vadd.f32 %v2370_v62, %v610_v5  ;;  %v438_v5 = vld [vmem:[%s3266_s4] sm:$0xff] }
  0xad   : > { %v631_v8 = vadd.f32 %v2371_v63, %v630_v6  ;;  %v590_v9 = vpop.f32.mrf.mxu1  ;;  %991 = vmatpush.msra.mxu0 %v438_v5  ;;  %v439_v6 = vld [vmem:[%s3266_s4 + $0x8] sm:$0xff]  ;;  %v2377_v5 = vld [vmem:[%s3270_s8] ss:$0 sm:$0xff] }
  0xae   : > { %v591_v10 = vadd.f32 %v2372_v1, %v590_v9  ;;  %2199 = vmatpush.xpose.msk.msrb.mxu2 %vm728_vm1, %v611_v7  ;;  %v440_v7 = vld [vmem:[%s3266_s4 + $0x10] sm:$0xff] }
  0xaf   : > { %2201 = vmatpush.xpose.msk.msrb.mxu3 %vm728_vm1, %v631_v8  ;;  %v441_v8 = vld [vmem:[%s3266_s4 + $0x18] sm:$0xff] }
  0xb0   : > { %2197 = vmatpush.xpose.msk.msra.mxu1 %vm728_vm1, %v591_v10 }
  0xb1   : > { %2200 = vmatmul.msk.f32.vlgmr.msrb.gmra.mxu2 %vm728_vm1, %v519_v11 }
  0xb2   : > { %2202 = vmatmul.msk.f32.vlgmr.msrb.gmra.mxu3 %vm728_vm1, %v539_v12 }
  0xb3   : > { %2198 = vmatmul.msk.f32.vlgmr.msra.gmra.mxu1 %vm728_vm1, %v499_v13 }
  0xb5   : > { %v685_v15 = vpop.f32.mrf.mxu1  ;;  %v705_v21 = vpop.f32.mrf.mxu2 }
  0xb6   : > { %v686_v18 = vadd.f32 %v2374_v14, %v685_v15  ;;  %v706_v22 = vadd.f32 %v2375_v19, %v705_v21  ;;  %v725_v23 = vpop.f32.mrf.mxu3  ;;  %v2855_v21 = vld [vmem:[%s3269_s7] sm:$0x3f] }
  0xb7   : > { %v726_v24 = vadd.f32 %v2376_v20, %v725_v23 }
  0xb8   : > { %922 = vmatpush.msrb.mxu1 %v686_v18  ;;  %945 = vmatpush.msra.mxu2 %v706_v22 }
  0xb9   : > { %968 = vmatpush.msra.mxu3 %v726_v24 }
  0xba   : > { %1014 = vmatpush.msra.mxu1 %v439_v6  ;;  %1037 = vmatpush.msrb.mxu2 %v440_v7 }
  0xbb   : > { %1060 = vmatpush.msrb.mxu3 %v441_v8 }
 0x121   : > { %v752_v25 = vpop.f32.mrf.mxu0 }
 0x122   : > { %v833_v26 = vmul.f32 0.35355338, %v752_v25  ;;  %v1072_v25 = vperm.slane %v2855_v21, 0 }
 0x124   : > { %v837_v27 = vsel %vm728_vm1, %v833_v26, -inf }
 0x125   : > { %838 = vmax.xlane.f32.xlu1 %v837_v27 }
 0x130   : > { %v778_v28 = vpop.f32.mrf.mxu1 }
 0x131   : > { %v834_v29 = vmul.f32 0.35355338, %v778_v28 }
 0x133   : > { %v840_v30 = vsel %vm728_vm1, %v834_v29, -inf }
 0x134   : > { %v804_v31 = vpop.f32.mrf.mxu2  ;;  %841 = vmax.xlane.f32.xlu1 %v840_v30 }
 0x135   : > { %v835_v32 = vmul.f32 0.35355338, %v804_v31  ;;  %v830_v34 = vpop.f32.mrf.mxu3  ;;  %v2499_v31 = vmov 32.0  }
 0x136   : > { %v836_v35 = vmul.f32 0.35355338, %v830_v34 }
 0x137   : > { %v843_v33 = vsel %vm728_vm1, %v835_v32, -inf }
 0x138   : > { %844 = vmax.xlane.f32.xlu0 %v843_v33  ;;  %v846_v36 = vsel %vm728_vm1, %v836_v35, -inf }
 0x140   : > { %847 = vmax.xlane.f32.xlu0 %v846_v36 }
 0x198   : > { %v839_v37 = vpop.xlane.xlu1 %838 }
 0x199   : > { %v849_v38 = vsub.f32 %v833_v26, %v839_v37 }
 0x19b   : > { %v853_v39 = vmul.f32 1.442695, %v849_v38 }
 0x19d   : > { %2391 = vpow2.f32 %v853_v39 }
 0x1a3   : > { %v2392_v40 = vpop.eup %2391 }
 0x1a4   : > { %v861_v41 = vsel %vm728_vm1, %v2392_v40, 0.0 }
 0x1a5   : > { %862 = vadd.xlane.f32.xlu0 %v861_v41 }
 0x1a7   : > { %v842_v42 = vpop.xlane.xlu1 %841 }
 0x1a8   : > { %v850_v43 = vsub.f32 %v834_v29, %v842_v42  ;;  %v1111_v42 = vld [vmem:[%s3267_s5 + $0x18] sm:$0xff] }
 0x1aa   : > { %v855_v44 = vmul.f32 1.442695, %v850_v43  ;;  %v1110_v43 = vld [vmem:[%s3267_s5 + $0x10] sm:$0xff] }
 0x1ab   : > { %v845_v45 = vpop.xlane.xlu0 %844 }
 0x1ac   : > { %2393 = vpow2.f32 %v855_v44  ;;  %v851_v46 = vsub.f32 %v835_v32, %v845_v45  ;;  %v1109_v44 = vld [vmem:[%s3267_s5 + $0x8] sm:$0xff]  ;;  %v1108_v45 = vld [vmem:[%s3267_s5] sm:$0xff] }
 0x1ae   : > { %v857_v47 = vmul.f32 1.442695, %v851_v46  ;;  %v1146_v46 = vld [vmem:[%s3268_s6 + $0x38] sm:$0xff] }
 0x1b0   : > { %2395 = vpow2.f32 %v857_v47  ;;  %v1145_v47 = vld [vmem:[%s3268_s6 + $0x30] sm:$0xff] }
 0x1b2   : > { %v2394_v48 = vpop.eup %2393 }
 0x1b3   : > { %v848_v49 = vpop.xlane.xlu0 %847  ;;  %v864_v50 = vsel %vm728_vm1, %v2394_v48, 0.0 }
 0x1b4   : > { %v852_v51 = vsub.f32 %v836_v35, %v848_v49  ;;  %865 = vadd.xlane.f32.xlu1 %v864_v50 }
 0x1b6   : > { %v2396_v52 = vpop.eup %2395  ;;  %v859_v53 = vmul.f32 1.442695, %v852_v51  ;;  %v1143_v51 = vld [vmem:[%s3268_s6 + $0x20] sm:$0xff] }
 0x1b7   : > { %v867_v54 = vsel %vm728_vm1, %v2396_v52, 0.0 }
 0x1b8   : > { %2397 = vpow2.f32 %v859_v53  ;;  %868 = vadd.xlane.f32.xlu2 %v867_v54  ;;  %v1142_v53 = vld [vmem:[%s3268_s6 + $0x18] sm:$0xff] }
 0x1be   : > { %v2398_v55 = vpop.eup %2397 }
 0x1bf   : > { %v870_v56 = vsel %vm728_vm1, %v2398_v55, 0.0 }
 0x1c0   : > { %871 = vadd.xlane.f32.xlu2 %v870_v56 }
 0x218   : > { %v863_v57 = vpop.xlane.xlu0 %862 }
 0x219   : > { %2399 = vrcp.f32 %v863_v57 }
 0x21f   : > { %v2400_v58 = vpop.eup %2399 }
 0x220   : > { %v877_v59 = vmul.f32 %v2400_v58, %v2392_v40 }
 0x222   : > { %2203 = vmatmul.msk.f32.vlgmr.msrb.gmra.mxu0 %vm728_vm1, %v877_v59 }
 0x223   : > { %1130 = vmatpush.msrb.mxu0 %v1111_v42 }
 0x225   : > { %1131 = vmatpush.msrb.mxu0 %v1110_v43  ;;  %v2256_v43 = vld [vmem:[%s3264_s2 + $0x2d8] sm:$0xff] }
 0x227   : > { %v866_v60 = vpop.xlane.xlu1 %865  ;;  %1132 = vmatpush.msrb.mxu0 %v1109_v44  ;;  %v2227_v44 = vld [vmem:[%s3264_s2 + $0x1f0] sm:$0xff] }
 0x228   : > { %2401 = vrcp.f32 %v866_v60  ;;  %v1104_v60 = vperm.slane %v2855_v21, 1 }
 0x229   : > { %1133 = vmatpush.msrb.mxu0 %v1108_v45  ;;  %v2231_v45 = vld [vmem:[%s3264_s2 + $0x210] sm:$0xff] }
 0x22b   : > { %v869_v61 = vpop.xlane.xlu2 %868 }
 0x22c   : > { %2403 = vrcp.f32 %v869_v61 }
 0x22e   : > { %v2402_v62 = vpop.eup %2401 }
 0x22f   : > { %v878_v63 = vmul.f32 %v2402_v62, %v2394_v48  ;;  %v1144_v48 = vld [vmem:[%s3268_s6 + $0x28] sm:$0xff] }
 0x231   : > { %2204 = vmatmul.msk.f32.vlgmr.msrb.gmra.mxu1 %vm728_vm1, %v878_v63  ;;  %v1106_v63 = vperm.slane %v2855_v21, 2 }
 0x232   : > { %v2404_v0 = vpop.eup %2403  ;;  %1160 = vmatpush.msrb.mxu1 %v1146_v46  ;;  %v2235_v46 = vld [vmem:[%s3264_s2 + $0x230] sm:$0xff] }
 0x233   : > { %v879_v1 = vmul.f32 %v2404_v0, %v2396_v52  ;;  %v872_v2 = vpop.xlane.xlu2 %871 }
 0x234   : > { %2405 = vrcp.f32 %v872_v2  ;;  %1161 = vmatpush.msrb.mxu1 %v1145_v47  ;;  %v1141_v2 = vld [vmem:[%s3268_s6 + $0x10] sm:$0xff] }
 0x235   : > { %2205 = vmatmul.msk.f32.vlgmr.msra.gmra.mxu2 %vm728_vm1, %v879_v1  ;;  %2407 = vrcp.f32 %v2499_v31  ;;  %v2218_v31 = vld [vmem:[%s3264_s2 + $0x1a8] sm:$0xff]  ;;  %v2255_v47 = vld [vmem:[%s3264_s2 + $0x2d0] sm:$0xff] }
 0x236   : > { %1162 = vmatpush.msrb.mxu1 %v1144_v48  ;;  %v2226_v48 = vld [vmem:[%s3264_s2 + $0x1e8] sm:$0xff] }
 0x238   : > { %1163 = vmatpush.msrb.mxu1 %v1143_v51  ;;  %v2234_v51 = vld [vmem:[%s3264_s2 + $0x228] sm:$0xff] }
 0x23a   : > { %v2406_v3 = vpop.eup %2405  ;;  %1164 = vmatpush.msrb.mxu1 %v1142_v53  ;;  %v2225_v53 = vld [vmem:[%s3264_s2 + $0x1e0] sm:$0xff] }
 0x23b   : > { %v880_v4 = vmul.f32 %v2406_v3, %v2398_v55  ;;  %v2408_v32 = vpop.eup %2407  ;;  %v1140_v3 = vld [vmem:[%s3268_s6 + $0x8] sm:$0xff] }
 0x23c   : > { %v1079_v33 = vmul.f32 32.0, %v2408_v32  ;;  %vm1083_vm2 = vweird.f32 %v2408_v32  ;;  %1165 = vmatpush.msrb.mxu1 %v1141_v2 }
 0x23d   : > { %2206 = vmatmul.msk.f32.vlgmr.msra.gmra.mxu3 %vm728_vm1, %v880_v4  ;;  %v1139_v4 = vld [vmem:[%s3268_s6] sm:$0xff] }
 0x23e   : > { %v1080_v34 = vsub.f32 1.0, %v1079_v33  ;;  %1166 = vmatpush.msrb.mxu1 %v1140_v3  ;;  %v2238_v33 = vld [vmem:[%s3264_s2 + $0x248] sm:$0xff] }
 0x240   : > { %v1081_v35 = vmul.f32 %v2408_v32, %v1080_v34  ;;  %1167 = vmatpush.msrb.mxu1 %v1139_v4  ;;  %v2213_v34 = vld [vmem:[%s3264_s2 + $0x180] sm:$0xff] }
 0x242   : > { %v1082_v36 = vadd.f32 %v2408_v32, %v1081_v35  ;;  %v2217_v35 = vld [vmem:[%s3264_s2 + $0x1a0] sm:$0xff] }
 0x244   : > { %v2861_v37 = vsel %vm1083_vm2, %v2408_v32, %v1082_v36  ;;  %v2222_v32 = vld [vmem:[%s3264_s2 + $0x1c8] sm:$0xff]  ;;  %v2221_v36 = vld [vmem:[%s3264_s2 + $0x1c0] sm:$0xff] }
 0x29f   : > { %v901_v9 = vpop.f32.mrf.mxu0 }
 0x2a0   : > { %2207 = vmatmul.msk.f32.vlgmr.msra.gmra.mxu0 %vm728_vm1, %v901_v9  ;;  %v1147_v9 = vperm.slane %v2855_v21, 3 }
 0x2ae   : > { %v924_v10 = vpop.f32.mrf.mxu1 }
 0x2af   : > { %2208 = vmatmul.msk.f32.vlgmr.msra.gmra.mxu1 %vm728_vm1, %v924_v10 }
 0x2b8   : > { %v947_v11 = vpop.f32.mrf.mxu2 }
 0x2b9   : > { %2209 = vmatmul.msk.f32.vlgmr.msrb.gmra.mxu2 %vm728_vm1, %v947_v11 }
 0x2c0   : > { %v970_v12 = vpop.f32.mrf.mxu3 }
 0x2c1   : > { %2210 = vmatmul.msk.f32.vlgmr.msrb.gmra.mxu3 %vm728_vm1, %v970_v12 }
 0x31d   : > { %v993_v14 = vpop.f32.mrf.mxu0 }
 0x31e   : > { %v1065_v19 = vsel %vm457_vm0, %v993_v14, 0.0 }
 0x32c   : > { %v1016_v13 = vpop.f32.mrf.mxu1 }
 0x32d   : > { %v1066_v18 = vsel %vm457_vm0, %v1016_v13, 0.0 }
 0x32e   : > { %v1067_v22 = vadd.f32 %v1066_v18, %v1065_v19 }
 0x33c   : > { %v1039_v15 = vpop.f32.mrf.mxu2 }
 0x33d   : > { %v1068_v20 = vsel %vm457_vm0, %v1039_v15, 0.0 }
 0x33e   : > { %v1069_v23 = vadd.f32 %v1068_v20, %v1067_v22  ;;  %v2216_v22 = vld [vmem:[%s3264_s2 + $0x198] sm:$0xff] }
 0x33f   : > { %1302 = vmatpush.msra.mxu2 %v2216_v22  ;;  %v2257_v22 = vld [vmem:[%s3264_s2 + $0x2e0] sm:$0xff] }
 0x344   : > { %v1062_v24 = vpop.f32.mrf.mxu3 }
 0x345   : > { %v1070_v26 = vsel %vm457_vm0, %v1062_v24, 0.0  ;;  %v2224_v24 = vld [vmem:[%s3264_s2 + $0x1d8] sm:$0xff] }
 0x346   : > { %v1071_v27 = vadd.f32 %v1070_v26, %v1069_v23  ;;  %v2220_v23 = vld [vmem:[%s3264_s2 + $0x1b8] sm:$0xff]  ;;  %1342 = vmatpush.msra.mxu0 %v2224_v24  ;;  %v2215_v26 = vld [vmem:[%s3264_s2 + $0x190] sm:$0xff]  ;;  %v2378_v24 = vld [vmem:[%s3265_s3 + $0xe] ss:$0 sm:$0xff] }
 0x347   : > { %1322 = vmatpush.msra.mxu3 %v2220_v23  ;;  %1303 = vmatpush.msra.mxu2 %v2215_v26  ;;  %v2379_v23 = vld [vmem:[%s3265_s3 + $0x12] ss:$0 sm:$0xff] }
 0x348   : > { %v1073_v28 = vadd.f32 %v1072_v25, %v1071_v27  ;;  %v2240_v25 = vld [vmem:[%s3264_s2 + $0x258] sm:$0xff]  ;;  %v2219_v27 = vld [vmem:[%s3264_s2 + $0x1b0] sm:$0xff] }
 0x349   : > { %1434 = vmatpush.msra.mxu1 %v2240_v25  ;;  %1323 = vmatpush.msra.mxu3 %v2219_v27 }
 0x34a   : > { %v1074_v29 = vadd.f32 %v1073_v28, %v2659_v16  ;;  %v2223_v28 = vld [vmem:[%s3264_s2 + $0x1d0] sm:$0xff] }
 0x34b   : > { %1343 = vmatpush.msra.mxu0 %v2223_v28  ;;  %1324 = vmatpush.msra.mxu3 %v2218_v31  ;;  %v2382_v31 = vld [vmem:[%s3265_s3 + $0x11] ss:$0 sm:$0xff] }
 0x34c   : > { %v1075_v30 = vsel %vm457_vm0, %v1074_v29, 0.0 }
 0x34d   : > { %1076 = vadd.xlane.f32.xlu2 %v1075_v30  ;;  %v2214_v30 = vld [vmem:[%s3264_s2 + $0x188] sm:$0xff]  ;;  %1344 = vmatpush.msra.mxu0 %v2222_v32  ;;  %v2383_v32 = vld [vmem:[%s3265_s3 + $0x16] ss:$0 sm:$0xff] }
 0x34e   : > { %1304 = vmatpush.msra.mxu2 %v2214_v30  ;;  %1325 = vmatpush.msra.mxu3 %v2217_v35 }
 0x34f   : > { %1345 = vmatpush.msra.mxu0 %v2221_v36 }
 0x350   : > { %1305 = vmatpush.msra.mxu2 %v2213_v34 }
 0x3c0   : > { %v1077_v38 = vpop.xlane.xlu2 %1076 }
 0x3c1   : > { %v1085_v39 = vmul.f32 %v2861_v37, %v1077_v38  ;;  %v2237_v38 = vld [vmem:[%s3264_s2 + $0x240] sm:$0xff] }
 0x3c3   : > { %v1086_v40 = vsub.f32 %v1074_v29, %v1085_v39  ;;  %v2239_v29 = vld [vmem:[%s3264_s2 + $0x250] sm:$0xff] }
 0x3c4   : > { %1435 = vmatpush.msra.mxu1 %v2239_v29 }
 0x3c5   : > { %v1087_v41 = vmul.f32 %v1086_v40, %v1086_v40 }
 0x3c6   : > { %1436 = vmatpush.msra.mxu1 %v2238_v33  ;;  %v2381_v33 = vld [vmem:[%s3265_s3 + $0xd] ss:$0 sm:$0xff] }
 0x3c7   : > { %v1088_v16 = vsel %vm457_vm0, %v1087_v41, 0.0  ;;  %v2232_v41 = vld [vmem:[%s3264_s2 + $0x218] sm:$0xff] }
 0x3c8   : > { %1089 = vadd.xlane.f32.xlu0 %v1088_v16  ;;  %1437 = vmatpush.msra.mxu1 %v2237_v38  ;;  %v2236_v16 = vld [vmem:[%s3264_s2 + $0x238] sm:$0xff] }
 0x3c9   : > { %1394 = vmatpush.msrb.mxu3 %v2232_v41  ;;  %v2380_v41 = vld [vmem:[%s3265_s3 + $0xc] ss:$0 sm:$0xff] }
 0x3cb   : > { %1395 = vmatpush.msrb.mxu3 %v2231_v45 }
 0x43b   : > { %v1090_v49 = vpop.xlane.xlu0 %1089 }
 0x43c   : > { %v1091_v50 = vmul.f32 %v1090_v49, %v2861_v37 }
 0x43e   : > { %v1092_v52 = vadd.f32 1e-05, %v1091_v50  ;;  %v2230_v50 = vld [vmem:[%s3264_s2 + $0x208] sm:$0xff] }
 0x43f   : > { %1396 = vmatpush.msrb.mxu3 %v2230_v50  ;;  %v2384_v50 = vld [vmem:[%s3265_s3 + $0xf] ss:$0 sm:$0xff] }
 0x440   : > { %2409 = vrsqrt.f32 %v1092_v52  ;;  %vm1099_vm4 = vweird.f32 %v1092_v52 }
 0x446   : > { %v2410_v54 = vpop.eup %2409 }
 0x447   : > { %v1094_v55 = vmul.f32 %v2410_v54, %v1092_v52  ;;  %vm1100_vm3 = vweird.f32 %v2410_v54  ;;  %v2254_v52 = vld [vmem:[%s3264_s2 + $0x2c8] sm:$0xff] }
 0x448   : > { %vm1101_vm5 = vmor %vm1099_vm4, %vm1100_vm3 }
 0x449   : > { %v1095_v56 = vmul.f32 %v2410_v54, %v1094_v55  ;;  %v2233_v55 = vld [vmem:[%s3264_s2 + $0x220] sm:$0xff] }
 0x44b   : > { %v1096_v57 = vmul.f32 0.5, %v1095_v56  ;;  %v2253_v56 = vld [vmem:[%s3264_s2 + $0x2c0] sm:$0xff] }
 0x44d   : > { %v1097_v58 = vsub.f32 1.5, %v1096_v57 }
 0x44f   : > { %v1098_v59 = vmul.f32 %v2410_v54, %v1097_v58 }
 0x451   : > { %v1102_v61 = vsel %vm1101_vm5, %v2410_v54, %v1098_v59  ;;  %v2229_v54 = vld [vmem:[%s3264_s2 + $0x200] sm:$0xff] }
 0x452   : > { %v1103_v62 = vmul.f32 %v1102_v61, %v1086_v40  ;;  %v2228_v40 = vld [vmem:[%s3264_s2 + $0x1f8] sm:$0xff]  ;;  %1397 = vmatpush.msrb.mxu3 %v2229_v54 }
 0x453   : > { %1362 = vmatpush.msrb.mxu2 %v2228_v40 }
 0x454   : > { %v1105_v0 = vmul.f32 %v1104_v60, %v1103_v62 }
 0x455   : > { %1363 = vmatpush.msrb.mxu2 %v2227_v44 }
 0x456   : > { %v1107_v1 = vadd.f32 %v1106_v63, %v1105_v0  ;;  %v1195_v63 = vperm.slane %v2855_v21, 4 }
 0x457   : > { %1364 = vmatpush.msrb.mxu2 %v2226_v48  ;;  %v2387_v48 = vld [vmem:[%s3265_s3 + $0x13] ss:$0 sm:$0xff] }
 0x458   : > { %2211 = vmatmul.msk.f32.vlgmr.msrb.gmra.mxu0 %vm457_vm0, %v1107_v1 }
 0x459   : > { %1414 = vmatpush.msrb.mxu0 %v2236_v16  ;;  %1365 = vmatpush.msrb.mxu2 %v2225_v53 }
 0x45b   : > { %1415 = vmatpush.msrb.mxu0 %v2235_v46 }
 0x45d   : > { %1416 = vmatpush.msrb.mxu0 %v2234_v51 }
 0x45f   : > { %1417 = vmatpush.msrb.mxu0 %v2233_v55 }
 0x4d5   : > { %v1135_v6 = vpop.f32.mrf.mxu0 }
 0x4d6   : > { %v1136_v7 = vadd.f32 %v2377_v5, %v1135_v6  ;;  %v2244_v6 = vld [vmem:[%s3264_s2 + $0x278] sm:$0xff] }
 0x4d8   : > { %v1138_v8 = vmax.f32 %v1136_v7, 0.0  ;;  %v2248_v7 = vld [vmem:[%s3264_s2 + $0x298] sm:$0xff] }
 0x4da   : > { %2212 = vmatmul.msk.f32.vlgmr.msrb.gmra.mxu1 %vm1148_vm6, %v1138_v8  ;;  %v2247_v8 = vld [vmem:[%s3264_s2 + $0x290] sm:$0xff] }
 0x4db   : > { %1529 = vmatpush.msrb.mxu1 %v2256_v43  ;;  %v2386_v43 = vld [vmem:[%s3265_s3 + $0x15] ss:$0 sm:$0xff] }
 0x4dd   : > { %1530 = vmatpush.msrb.mxu1 %v2255_v47 }
 0x4df   : > { %1531 = vmatpush.msrb.mxu1 %v2254_v52 }
 0x4e1   : > { %1532 = vmatpush.msrb.mxu1 %v2253_v56  ;;  %v2389_v56 = vld [vmem:[%s3265_s3 + $0x17] ss:$0 sm:$0xff] }
 0x557   : > { %v1169_v10 = vpop.f32.mrf.mxu1 }
 0x558   : > { %v1170_v11 = vadd.f32 %v1169_v10, %v1147_v9  ;;  %v2251_v9 = vld [vmem:[%s3264_s2 + $0x2b0] sm:$0xff]  ;;  %v2242_v10 = vld [vmem:[%s3264_s2 + $0x268] sm:$0xff] }
 0x55a   : > { %v1172_v12 = vadd.f32 %v1170_v11, %v1107_v1  ;;  %v1197_v1 = vperm.slane %v2855_v21, 5  ;;  %v2252_v21 = vld [vmem:[%s3264_s2 + $0x2b8] sm:$0xff]  ;;  %v2246_v11 = vld [vmem:[%s3264_s2 + $0x288] sm:$0xff] }
 0x55c   : > { %v1173_v13 = vsel %vm457_vm0, %v1172_v12, 0.0 }
 0x55d   : > { %1174 = vadd.xlane.f32.xlu1 %v1173_v13  ;;  %v2241_v13 = vld [vmem:[%s3264_s2 + $0x260] sm:$0xff] }
 0x5d0   : > { %v1175_v14 = vpop.xlane.xlu1 %1174 }
 0x5d1   : > { %v1176_v15 = vmul.f32 %v1175_v14, %v2861_v37  ;;  %v2245_v14 = vld [vmem:[%s3264_s2 + $0x280] sm:$0xff] }
 0x5d3   : > { %v2912_v18 = vsub.f32 %v1172_v12, %v1176_v15  ;;  %v2250_v12 = vld [vmem:[%s3264_s2 + $0x2a8] sm:$0xff]  ;;  %v2249_v15 = vld [vmem:[%s3264_s2 + $0x2a0] sm:$0xff] }
 0x5d5   : > { %v1178_v19 = vmul.f32 %v2912_v18, %v2912_v18 }
 0x5d7   : > { %v1179_v20 = vsel %vm457_vm0, %v1178_v19, 0.0  ;;  %v2259_v19 = vld [vmem:[%s3264_s2 + $0x2f0] sm:$0xff] }
 0x5d8   : > { %1180 = vadd.xlane.f32.xlu2 %v1179_v20  ;;  %v2258_v20 = vld [vmem:[%s3264_s2 + $0x2e8] sm:$0xff] }
 0x64b   : > { %v1181_v39 = vpop.xlane.xlu2 %1180 }
 0x64c   : > { %v1182_v42 = vmul.f32 %v1181_v39, %v2861_v37  ;;  %v2385_v39 = vld [vmem:[%s3265_s3 + $0x10] ss:$0 sm:$0xff] }
 0x64e   : > { %v1183_v49 = vadd.f32 1e-05, %v1182_v42 }
 0x650   : > { %2411 = vrsqrt.f32 %v1183_v49  ;;  %vm1190_vm8 = vweird.f32 %v1183_v49 }
 0x656   : > { %v2412_v57 = vpop.eup %2411 }
 0x657   : > { %v1185_v58 = vmul.f32 %v2412_v57, %v1183_v49  ;;  %vm1191_vm7 = vweird.f32 %v2412_v57  ;;  %v2388_v49 = vld [vmem:[%s3265_s3 + $0x14] ss:$0 sm:$0xff] }
 0x658   : > { %vm1192_vm9 = vmor %vm1190_vm8, %vm1191_vm7 }
 0x659   : > { %v1186_v59 = vmul.f32 %v2412_v57, %v1185_v58 }
 0x65b   : > { %v1187_v60 = vmul.f32 0.5, %v1186_v59 }
 0x65d   : > { %v1188_v61 = vsub.f32 1.5, %v1187_v60 }
 0x65f   : > { %v1189_v62 = vmul.f32 %v2412_v57, %v1188_v61 }
 0x661   : > { %v1193_v0 = vsel %vm1192_vm9, %v2412_v57, %v1189_v62 }
 0x662   : > { %v1194_v2 = vmul.f32 %v1193_v0, %v2912_v18  ;;  %v2260_v18 = vld [vmem:[%s3264_s2 + $0x2f8] sm:$0xff] }
 0x664   : > { %v1196_v3 = vmul.f32 %v1195_v63, %v1194_v2 }
 0x666   : > { %v3017_v4 = vadd.f32 %v1197_v1, %v1196_v3 }
 0x668   : > { %v1274_v5 = vadd.f32 %v3017_v4, %v2661_v17  ;;  %v2243_v17 = vld [vmem:[%s3264_s2 + $0x270] sm:$0xff] }
 0x66a   : > { %2279 = vmatmul.msk.f32.vlgmr.msra.gmra.mxu2 %vm457_vm0, %v1274_v5  ;;  %2280 = vmatmul.msk.f32.vlgmr.msra.gmra.mxu3 %vm457_vm0, %v1274_v5 }
 0x66b   : > { %2281 = vmatmul.msk.f32.vlgmr.msra.gmra.mxu0 %vm457_vm0, %v1274_v5  ;;  %2285 = vmatmul.msk.f32.vlgmr.msra.gmra.mxu1 %vm457_vm0, %v1274_v5 }
 0x66c   : > { %1454 = vmatpush.msra.mxu2 %v2244_v6  ;;  %1489 = vmatpush.msra.mxu3 %v2248_v7 }
 0x66d   : > { %1509 = vmatpush.msra.mxu0 %v2252_v21 }
 0x66e   : > { %1455 = vmatpush.msra.mxu2 %v2243_v17  ;;  %1490 = vmatpush.msra.mxu3 %v2247_v8 }
 0x66f   : > { %1510 = vmatpush.msra.mxu0 %v2251_v9 }
 0x670   : > { %1456 = vmatpush.msra.mxu2 %v2242_v10  ;;  %1491 = vmatpush.msra.mxu3 %v2246_v11 }
 0x671   : > { %1511 = vmatpush.msra.mxu0 %v2250_v12 }
 0x672   : > { %2282 = vmatmul.msk.f32.vlgmr.msrb.gmra.mxu2 %vm457_vm0, %v1274_v5  ;;  %2283 = vmatmul.msk.f32.vlgmr.msrb.gmra.mxu3 %vm457_vm0, %v1274_v5 }
 0x673   : > { %2284 = vmatmul.msk.f32.vlgmr.msrb.gmra.mxu0 %vm457_vm0, %v1274_v5  ;;  %2289 = vmatmul.msk.f32.vlgmr.msrb.gmra.mxu1 %vm457_vm0, %v3017_v4 }
 0x674   : > { %1457 = vmatpush.msra.mxu2 %v2241_v13  ;;  %1492 = vmatpush.msra.mxu3 %v2245_v14 }
 0x675   : > { %1512 = vmatpush.msra.mxu0 %v2249_v15 }
 0x676   : > { %1549 = vmatpush.msrb.mxu2 %v2260_v18 }
 0x678   : > { %1550 = vmatpush.msrb.mxu2 %v2259_v19 }
 0x67a   : > { %1551 = vmatpush.msrb.mxu2 %v2258_v20  ;;  %2287 = vmatmul.msk.f32.vlgmr.msra.gmra.mxu3 %vm457_vm0, %v3017_v4 }
 0x67b   : > { %2286 = vmatmul.msk.f32.vlgmr.msra.gmra.mxu2 %vm457_vm0, %v1274_v5  ;;  %2288 = vmatmul.msk.f32.vlgmr.msra.gmra.mxu0 %vm457_vm0, %v3017_v4 }
 0x67c   : > { %1552 = vmatpush.msrb.mxu2 %v2257_v22 }
 0x683   : > { %2290 = vmatmul.msk.f32.vlgmr.msrb.gmra.mxu2 %vm457_vm0, %v3017_v4 }
 0x6e8   : > { %v1347_v25 = vpop.f32.mrf.mxu0  ;;  %v1439_v26 = vpop.f32.mrf.mxu1 }
 0x6e9   : > { %v1440_v27 = vadd.f32 %v2379_v23, %v1439_v26  ;;  %v1348_v28 = vadd.f32 %v2378_v24, %v1347_v25 }
 0x6eb   : > { %2295 = vmatpush.xpose.msk.msra.mxu1 %vm728_vm1, %v1440_v27 }
 0x6ed   : > { %v1307_v29 = vpop.f32.mrf.mxu2  ;;  %v1327_v30 = vpop.f32.mrf.mxu3 }
 0x6ee   : > { %2296 = vmatmul.msk.f32.vlgmr.msra.gmra.mxu1 %vm728_vm1, %v1348_v28  ;;  %v1328_v40 = vadd.f32 %v2381_v33, %v1327_v30  ;;  %v1308_v46 = vadd.f32 %v2380_v41, %v1307_v29 }
 0x6f0   : > { %v1419_v34 = vpop.f32.mrf.mxu0  ;;  %v1534_v35 = vpop.f32.mrf.mxu1 }
 0x6f1   : > { %v1420_v36 = vadd.f32 %v2382_v31, %v1419_v34  ;;  %v1535_v38 = vadd.f32 %v2383_v32, %v1534_v35 }
 0x6f3   : > { %2293 = vmatpush.xpose.msk.msrb.mxu0 %vm728_vm1, %v1420_v36  ;;  %1773 = vmatpush.msrb.mxu1 %v1535_v38 }
 0x6f5   : > { %v1367_v16 = vpop.f32.mrf.mxu2  ;;  %v1399_v42 = vpop.f32.mrf.mxu3 }
 0x6f6   : > { %v1400_v44 = vadd.f32 %v2385_v39, %v1399_v42  ;;  %2294 = vmatmul.msk.f32.vlgmr.msrb.gmra.mxu0 %vm728_vm1, %v1328_v40  ;;  %v1368_v55 = vadd.f32 %v2384_v50, %v1367_v16  ;;  %v2274_v16 = vld [vmem:[%s3266_s4 + $0x28] sm:$0xff]  ;;  %v2273_v42 = vld [vmem:[%s3266_s4 + $0x20] sm:$0xff] }
 0x6f8   : > { %v1514_v45 = vpop.f32.mrf.mxu0  ;;  %2291 = vmatpush.xpose.msk.msrb.mxu3 %vm728_vm1, %v1400_v44  ;;  %v2276_v44 = vld [vmem:[%s3266_s4 + $0x38] sm:$0xff] }
 0x6f9   : > { %v1515_v47 = vadd.f32 %v2386_v43, %v1514_v45  ;;  %v2275_v43 = vld [vmem:[%s3266_s4 + $0x30] sm:$0xff] }
 0x6fa   : > { %1865 = vmatpush.msra.mxu1 %v2275_v43 }
 0x6fb   : > { %1750 = vmatpush.msra.mxu0 %v1515_v47  ;;  %2292 = vmatmul.msk.f32.vlgmr.msrb.gmra.mxu3 %vm728_vm1, %v1308_v46 }
 0x6fd   : > { %v1494_v52 = vpop.f32.mrf.mxu3  ;;  %1842 = vmatpush.msrb.mxu0 %v2274_v16 }
 0x6fe   : > { %v1459_v51 = vpop.f32.mrf.mxu2  ;;  %v1495_v54 = vadd.f32 %v2388_v49, %v1494_v52 }
 0x6ff   : > { %v1460_v53 = vadd.f32 %v2387_v48, %v1459_v51 }
 0x700   : > { %1727 = vmatpush.msra.mxu3 %v1495_v54 }
 0x701   : > { %2297 = vmatpush.xpose.msk.msra.mxu2 %vm728_vm1, %v1460_v53 }
 0x702   : > { %1819 = vmatpush.msrb.mxu3 %v2273_v42 }
 0x704   : > { %2298 = vmatmul.msk.f32.vlgmr.msra.gmra.mxu2 %vm728_vm1, %v1368_v55  ;;  %v3162_v55 = vld [vmem:[%s3269_s7 + $0x8] sm:$0x3f] }
 0x706   : > { %v1554_v57 = vpop.f32.mrf.mxu2 }
 0x707   : > { %v1555_v58 = vadd.f32 %v2389_v56, %v1554_v57 }
 0x709   : > { %1796 = vmatpush.msrb.mxu2 %v1555_v58 }
 0x70b   : > { %1888 = vmatpush.msra.mxu2 %v2276_v44 }
 0x76b   : > { %v1632_v1 = vpop.f32.mrf.mxu1 }
 0x76c   : > { %v1663_v2 = vmul.f32 0.35355338, %v1632_v1 }
 0x76e   : > { %v1671_v7 = vsel %vm728_vm1, %v1663_v2, -inf }
 0x773   : > { %v1606_v59 = vpop.f32.mrf.mxu0 }
 0x774   : > { %v1662_v60 = vmul.f32 0.35355338, %v1606_v59  ;;  %v1900_v59 = vperm.slane %v3162_v55, 0 }
 0x776   : > { %v1668_v61 = vsel %vm728_vm1, %v1662_v60, -inf }
 0x777   : > { %1669 = vmax.xlane.f32.xlu2 %v1668_v61 }
 0x77e   : > { %v1580_v62 = vpop.f32.mrf.mxu3 }
 0x77f   : > { %v1661_v63 = vmul.f32 0.35355338, %v1580_v62 }
 0x781   : > { %v1665_v0 = vsel %vm728_vm1, %v1661_v63, -inf }
 0x782   : > { %1666 = vmax.xlane.f32.xlu0 %v1665_v0 }
 0x787   : > { %v1658_v3 = vpop.f32.mrf.mxu2 }
 0x788   : > { %v1664_v5 = vmul.f32 0.35355338, %v1658_v3 }
 0x78a   : > { %v1674_v6 = vsel %vm728_vm1, %v1664_v5, -inf  ;;  %1672 = vmax.xlane.f32.xlu0 %v1671_v7  ;;  %v2310_v7 = vld [vmem:[%s3267_s5 + $0x38] sm:$0xff] }
 0x78b   : > { %1675 = vmax.xlane.f32.xlu1 %v1674_v6 }
 0x7ea   : > { %v1670_v21 = vpop.xlane.xlu2 %1669 }
 0x7eb   : > { %v1678_v17 = vsub.f32 %v1662_v60, %v1670_v21  ;;  %v2308_v21 = vld [vmem:[%s3267_s5 + $0x28] sm:$0xff] }
 0x7ed   : > { %v1683_v8 = vmul.f32 1.442695, %v1678_v17  ;;  %v2307_v17 = vld [vmem:[%s3267_s5 + $0x20] sm:$0xff] }
 0x7ef   : > { %2413 = vpow2.f32 %v1683_v8  ;;  %v2319_v8 = vld [vmem:[%s3268_s6 + $0x78] sm:$0xff] }
 0x7f5   : > { %v2414_v9 = vpop.eup %2413  ;;  %v1667_v10 = vpop.xlane.xlu0 %1666 }
 0x7f6   : > { %v1677_v11 = vsub.f32 %v1661_v63, %v1667_v10  ;;  %v1692_v12 = vsel %vm728_vm1, %v2414_v9, 0.0  ;;  %v2317_v10 = vld [vmem:[%s3268_s6 + $0x68] sm:$0xff] }
 0x7f7   : > { %1693 = vadd.xlane.f32.xlu0 %v1692_v12 }
 0x7f8   : > { %v1681_v13 = vmul.f32 1.442695, %v1677_v11 }
 0x7fa   : > { %2415 = vpow2.f32 %v1681_v13  ;;  %v2316_v13 = vld [vmem:[%s3268_s6 + $0x60] sm:$0xff] }
 0x7fd   : > { %v1673_v15 = vpop.xlane.xlu0 %1672 }
 0x7fe   : > { %v1676_v14 = vpop.xlane.xlu1 %1675  ;;  %v1679_v19 = vsub.f32 %v1663_v2, %v1673_v15  ;;  %v2315_v15 = vld [vmem:[%s3268_s6 + $0x58] sm:$0xff] }
 0x7ff   : > { %v1680_v18 = vsub.f32 %v1664_v5, %v1676_v14 }
 0x800   : > { %v2416_v20 = vpop.eup %2415  ;;  %v1685_v23 = vmul.f32 1.442695, %v1679_v19 }
 0x801   : > { %v1687_v22 = vmul.f32 1.442695, %v1680_v18  ;;  %v1689_v24 = vsel %vm728_vm1, %v2416_v20, 0.0 }
 0x802   : > { %1690 = vadd.xlane.f32.xlu1 %v1689_v24 }
 0x803   : > { %2417 = vpow2.f32 %v1687_v22 }
 0x804   : > { %2419 = vpow2.f32 %v1685_v23 }
 0x809   : > { %v2418_v25 = vpop.eup %2417 }
 0x80a   : > { %v2420_v26 = vpop.eup %2419  ;;  %v1698_v27 = vsel %vm728_vm1, %v2418_v25, 0.0 }
 0x80b   : > { %1699 = vadd.xlane.f32.xlu2 %v1698_v27  ;;  %v1695_v28 = vsel %vm728_vm1, %v2420_v26, 0.0 }
 0x80c   : > { %1696 = vadd.xlane.f32.xlu1 %v1695_v28  ;;  %v1927_v28 = vperm.slane %v3162_v55, 2 }
 0x86a   : > { %v1694_v29 = vpop.xlane.xlu0 %1693 }
 0x86b   : > { %2421 = vrcp.f32 %v1694_v29 }
 0x871   : > { %v2422_v30 = vpop.eup %2421 }
 0x872   : > { %v1706_v31 = vmul.f32 %v2422_v30, %v2414_v9  ;;  %v2318_v9 = vld [vmem:[%s3268_s6 + $0x70] sm:$0xff] }
 0x874   : > { %2300 = vmatmul.msk.f32.vlgmr.msra.gmra.mxu0 %vm728_vm1, %v1706_v31  ;;  %v2314_v31 = vld [vmem:[%s3268_s6 + $0x50] sm:$0xff] }
 0x875   : > { %v1691_v32 = vpop.xlane.xlu1 %1690  ;;  %1982 = vmatpush.msra.mxu0 %v2319_v8 }
 0x876   : > { %2423 = vrcp.f32 %v1691_v32  ;;  %v2313_v32 = vld [vmem:[%s3268_s6 + $0x48] sm:$0xff] }
 0x877   : > { %1983 = vmatpush.msra.mxu0 %v2318_v9 }
 0x879   : > { %1984 = vmatpush.msra.mxu0 %v2317_v10 }
 0x87b   : > { %1985 = vmatpush.msra.mxu0 %v2316_v13 }
 0x87c   : > { %v2424_v33 = vpop.eup %2423 }
 0x87d   : > { %v1705_v34 = vmul.f32 %v2424_v33, %v2416_v20  ;;  %1986 = vmatpush.msra.mxu0 %v2315_v15  ;;  %v2312_v33 = vld [vmem:[%s3268_s6 + $0x40] sm:$0xff] }
 0x87e   : > { %v1700_v35 = vpop.xlane.xlu2 %1699 }
 0x87f   : > { %2425 = vrcp.f32 %v1700_v35  ;;  %v1697_v36 = vpop.xlane.xlu1 %1696  ;;  %2299 = vmatmul.msk.f32.vlgmr.msra.gmra.mxu3 %vm728_vm1, %v1705_v34  ;;  %1987 = vmatpush.msra.mxu0 %v2314_v31  ;;  %v2390_v34 = vld [vmem:[%s3270_s8 + $0x1] ss:$0 sm:$0xff] }
 0x880   : > { %2427 = vrcp.f32 %v1697_v36  ;;  %1952 = vmatpush.msra.mxu3 %v2310_v7 }
 0x881   : > { %1988 = vmatpush.msra.mxu0 %v2313_v32 }
 0x883   : > { %1989 = vmatpush.msra.mxu0 %v2312_v33 }
 0x885   : > { %v2426_v38 = vpop.eup %2425 }
 0x886   : > { %v2428_v39 = vpop.eup %2427  ;;  %v1708_v40 = vmul.f32 %v2426_v38, %v2418_v25  ;;  %v1925_v25 = vperm.slane %v3162_v55, 1 }
 0x887   : > { %v1707_v41 = vmul.f32 %v2428_v39, %v2420_v26  ;;  %v1970_v39 = vperm.slane %v3162_v55, 3 }
 0x888   : > { %2302 = vmatmul.msk.f32.vlgmr.msrb.gmra.mxu2 %vm728_vm1, %v1708_v40 }
 0x889   : > { %2301 = vmatmul.msk.f32.vlgmr.msrb.gmra.mxu1 %vm728_vm1, %v1707_v41 }
 0x8f1   : > { %v1752_v45 = vpop.f32.mrf.mxu0 }
 0x8f2   : > { %2304 = vmatmul.msk.f32.vlgmr.msrb.gmra.mxu0 %vm728_vm1, %v1752_v45 }
 0x902   : > { %v1729_v46 = vpop.f32.mrf.mxu3 }
 0x903   : > { %2303 = vmatmul.msk.f32.vlgmr.msrb.gmra.mxu3 %vm728_vm1, %v1729_v46 }
 0x906   : > { %v1775_v47 = vpop.f32.mrf.mxu1 }
 0x907   : > { %2305 = vmatmul.msk.f32.vlgmr.msra.gmra.mxu1 %vm728_vm1, %v1775_v47 }
 0x90b   : > { %v1798_v48 = vpop.f32.mrf.mxu2 }
 0x90c   : > { %2306 = vmatmul.msk.f32.vlgmr.msra.gmra.mxu2 %vm728_vm1, %v1798_v48 }
 0x96f   : > { %v1844_v49 = vpop.f32.mrf.mxu0 }
 0x970   : > { %v1894_v52 = vsel %vm457_vm0, %v1844_v49, 0.0 }
 0x984   : > { %v1867_v53 = vpop.f32.mrf.mxu1 }
 0x985   : > { %v1896_v56 = vsel %vm457_vm0, %v1867_v53, 0.0 }
 0x986   : > { %v1821_v50 = vpop.f32.mrf.mxu3 }
 0x987   : > { %v1893_v51 = vsel %vm457_vm0, %v1821_v50, 0.0 }
 0x988   : > { %v1895_v54 = vadd.f32 %v1894_v52, %v1893_v51 }
 0x98a   : > { %v1897_v58 = vadd.f32 %v1896_v56, %v1895_v54 }
 0x98f   : > { %v1890_v57 = vpop.f32.mrf.mxu2 }
 0x990   : > { %v1898_v60 = vsel %vm457_vm0, %v1890_v57, 0.0 }
 0x991   : > { %v1899_v61 = vadd.f32 %v1898_v60, %v1897_v58  ;;  %v2017_v58 = vperm.slane %v3162_v55, 4 }
 0x993   : > { %v1901_v62 = vadd.f32 %v1900_v59, %v1899_v61  ;;  %v2019_v61 = vperm.slane %v3162_v55, 5 }
 0x995   : > { %v1902_v63 = vadd.f32 %v1901_v62, %v3017_v4  ;;  %v2309_v4 = vld [vmem:[%s3267_s5 + $0x30] sm:$0xff] }
 0x996   : > { %1953 = vmatpush.msra.mxu3 %v2309_v4 }
 0x997   : > { %v1903_v0 = vsel %vm457_vm0, %v1902_v63, 0.0 }
 0x998   : > { %1904 = vadd.xlane.f32.xlu2 %v1903_v0  ;;  %1954 = vmatpush.msra.mxu3 %v2308_v21 }
 0x99a   : > { %1955 = vmatpush.msra.mxu3 %v2307_v17 }
 0xa0b   : > { %v1905_v1 = vpop.xlane.xlu2 %1904 }
 0xa0c   : > { %v1906_v2 = vmul.f32 %v1905_v1, %v2861_v37 }
 0xa0e   : > { %v1907_v3 = vsub.f32 %v1902_v63, %v1906_v2 }
 0xa10   : > { %v1908_v5 = vmul.f32 %v1907_v3, %v1907_v3 }
 0xa12   : > { %v1909_v6 = vsel %vm457_vm0, %v1908_v5, 0.0 }
 0xa13   : > { %1910 = vadd.xlane.f32.xlu0 %v1909_v6 }
 0xa86   : > { %v1911_v11 = vpop.xlane.xlu0 %1910 }
 0xa87   : > { %v1912_v12 = vmul.f32 %v1911_v11, %v2861_v37  ;;  %v2021_v11 = vld [vmem:[%s3271_s9] sm:$0x3] }
 0xa88   : > { %v2044_v13 = vperm.slane %v2021_v11, 0  ;;  %v2046_v15 = vperm.slane %v2021_v11, 1 }
 0xa89   : > { %v1913_v14 = vadd.f32 1e-05, %v1912_v12 }
 0xa8b   : > { %2429 = vrsqrt.f32 %v1913_v14  ;;  %vm1920_vm11 = vweird.f32 %v1913_v14 }
 0xa91   : > { %v2430_v18 = vpop.eup %2429 }
 0xa92   : > { %v1915_v19 = vmul.f32 %v2430_v18, %v1913_v14  ;;  %vm1921_vm10 = vweird.f32 %v2430_v18 }
 0xa93   : > { %vm1922_vm12 = vmor %vm1920_vm11, %vm1921_vm10 }
 0xa94   : > { %v1916_v20 = vmul.f32 %v2430_v18, %v1915_v19 }
 0xa96   : > { %v1917_v22 = vmul.f32 0.5, %v1916_v20 }
 0xa98   : > { %v1918_v23 = vsub.f32 1.5, %v1917_v22 }
 0xa9a   : > { %v1919_v24 = vmul.f32 %v2430_v18, %v1918_v23 }
 0xa9c   : > { %v1923_v26 = vsel %vm1922_vm12, %v2430_v18, %v1919_v24 }
 0xa9d   : > { %v1924_v27 = vmul.f32 %v1923_v26, %v1907_v3 }
 0xa9f   : > { %v1926_v29 = vmul.f32 %v1925_v25, %v1924_v27 }
 0xaa1   : > { %v1928_v30 = vadd.f32 %v1927_v28, %v1926_v29 }
 0xaa3   : > { %2311 = vmatmul.msk.f32.vlgmr.msra.gmra.mxu3 %vm457_vm0, %v1928_v30 }
 0xb26   : > { %v1957_v35 = vpop.f32.mrf.mxu3 }
 0xb27   : > { %v1958_v36 = vadd.f32 %v2390_v34, %v1957_v35 }
 0xb29   : > { %v1960_v38 = vmax.f32 %v1958_v36, 0.0 }
 0xb2b   : > { %2320 = vmatmul.msk.f32.vlgmr.msra.gmra.mxu0 %vm1148_vm6, %v1960_v38 }
 0xba8   : > { %v1991_v40 = vpop.f32.mrf.mxu0 }
 0xba9   : > { %v1992_v41 = vadd.f32 %v1991_v40, %v1970_v39 }
 0xbab   : > { %v1994_v16 = vadd.f32 %v1992_v41, %v1928_v30 }
 0xbad   : > { %v1995_v42 = vsel %vm457_vm0, %v1994_v16, 0.0 }
 0xbae   : > { %1996 = vadd.xlane.f32.xlu1 %v1995_v42 }
 0xc21   : > { %v1997_v43 = vpop.xlane.xlu1 %1996 }
 0xc22   : > { %v1998_v44 = vmul.f32 %v1997_v43, %v2861_v37 }
 0xc24   : > { %v1999_v45 = vsub.f32 %v1994_v16, %v1998_v44 }
 0xc26   : > { %v2000_v46 = vmul.f32 %v1999_v45, %v1999_v45 }
 0xc28   : > { %v2001_v47 = vsel %vm457_vm0, %v2000_v46, 0.0 }
 0xc29   : > { %2002 = vadd.xlane.f32.xlu2 %v2001_v47 }
 0xc9c   : > { %v2003_v48 = vpop.xlane.xlu2 %2002 }
 0xc9d   : > { %v2004_v49 = vmul.f32 %v2003_v48, %v2861_v37 }
 0xc9f   : > { %v2005_v50 = vadd.f32 1e-05, %v2004_v49 }
 0xca1   : > { %2431 = vrsqrt.f32 %v2005_v50  ;;  %vm2012_vm14 = vweird.f32 %v2005_v50 }
 0xca7   : > { %v2432_v51 = vpop.eup %2431 }
 0xca8   : > { %v2007_v52 = vmul.f32 %v2432_v51, %v2005_v50  ;;  %vm2013_vm13 = vweird.f32 %v2432_v51 }
 0xca9   : > { %vm2014_vm15 = vmor %vm2012_vm14, %vm2013_vm13 }
 0xcaa   : > { %v2008_v53 = vmul.f32 %v2432_v51, %v2007_v52 }
 0xcac   : > { %v2009_v54 = vmul.f32 0.5, %v2008_v53 }
 0xcae   : > { %v2010_v56 = vsub.f32 1.5, %v2009_v54 }
 0xcb0   : > { %v2011_v57 = vmul.f32 %v2432_v51, %v2010_v56 }
 0xcb2   : > { %v2015_v59 = vsel %vm2014_vm15, %v2432_v51, %v2011_v57 }
 0xcb3   : > { %v2016_v60 = vmul.f32 %v2015_v59, %v1999_v45 }
 0xcb5   : > { %v2018_v62 = vmul.f32 %v2017_v58, %v2016_v60 }
 0xcb7   : > { %v2020_v63 = vadd.f32 %v2019_v61, %v2018_v62 }
 0xcb9   : > { %v2022_v0 = vsel %vm457_vm0, %v2020_v63, 0.0 }
 0xcba   : > { %2023 = vadd.xlane.f32.xlu0 %v2022_v0 }
 0xd2d   : > { %v2024_v1 = vpop.xlane.xlu0 %2023 }
 0xd2e   : > { %v2025_v2 = vmul.f32 %v2024_v1, %v2861_v37 }
 0xd30   : > { %v2026_v3 = vsub.f32 %v2020_v63, %v2025_v2 }
 0xd32   : > { %v2027_v5 = vmul.f32 %v2026_v3, %v2026_v3 }
 0xd34   : > { %v2028_v6 = vsel %vm457_vm0, %v2027_v5, 0.0 }
 0xd35   : > { %2029 = vadd.xlane.f32.xlu1 %v2028_v6 }
 0xda8   : > { %v2030_v7 = vpop.xlane.xlu1 %2029 }
 0xda9   : > { %v2031_v4 = vmul.f32 %v2030_v7, %v2861_v37 }
 0xdab   : > { %v2032_v21 = vadd.f32 1e-05, %v2031_v4 }
 0xdad   : > { %2433 = vrsqrt.f32 %v2032_v21  ;;  %vm2039_vm2 = vweird.f32 %v2032_v21 }
 0xdb3   : > { %v2434_v55 = vpop.eup %2433 }
 0xdb4   : > { %v2034_v17 = vmul.f32 %v2434_v55, %v2032_v21  ;;  %vm2040_vm1 = vweird.f32 %v2434_v55 }
 0xdb5   : > { %vm2041_vm3 = vmor %vm2039_vm2, %vm2040_vm1 }
 0xdb6   : > { %v2035_v8 = vmul.f32 %v2434_v55, %v2034_v17 }
 0xdb8   : > { %v2036_v9 = vmul.f32 0.5, %v2035_v8 }
 0xdba   : > { %v2037_v10 = vsub.f32 1.5, %v2036_v9 }
 0xdbc   : > { %v2038_v12 = vmul.f32 %v2434_v55, %v2037_v10 }
 0xdbe   : > { %v2042_v37 = vsel %vm2041_vm3, %v2434_v55, %v2038_v12 }
 0xdbf   : > { %v2043_v14 = vmul.f32 %v2042_v37, %v2026_v3 }
 0xdc1   : > { %v2045_v18 = vmul.f32 %v2044_v13, %v2043_v14 }
 0xdc3   : > { %v2047_v19 = vadd.f32 %v2046_v15, %v2045_v18 }
 0xdc5   : > { %2048 = vst.msk [vmem:[%s363_s15] sm:$0xff] %vm457_vm0, %v2047_v19 }
 0xdc6   : > { %2462 = shalt.err (!%p2459_p3)
}
 0xdc7   : > { %2325 = dma.vmem_to_hbm [thread:$0]  (%p2593_p5), %s2063_s11, 128, %s2065_s18, %s2050_s17  }
 0xdc8 PF: > { %p2331_p4 = scmp.ge.s32.totalorder %s2497_s16, 2  ;;  %s2076_s25 = sand.u32 1, %s2485_s13  }
 0xdc9   : > { %s2077_s22 = scalar_lea.sflag [#allocation3], %s2076_s25 }
 0xdca   : > { %p2328_p7 = pnand %p2331_p4, %p2597_p6 }
 0xdcc   : > { %p2329_p8 = pneg %p2328_p7 }
 0xdce   : > { %2480 = dma.done.wait (%p2329_p8), %s2077_s22, 128  }
 0xdcf   : > { %2482 = vsyncadd (%p2329_p8), %s2077_s22, 4294967168  ;;  %s3278_s12 = sld [smem:[#allocation5_spill]]  ;;  %p20_p9 = scmp.ge.s32.totalorder %s2580_s19, 4  }
 0xdd0   : > { %s3279_s15 = sld [smem:[#allocation6_spill]]  ;;  %s3280_s13 = smov %s2489_s14 }
 0xdd1   : > { %s3282_s16 = smov %s2580_s19  ;;  %22 = sbr.rel (!%p20_p9) target bundleno = 3 (0x3), region = 113 }
 0xdd5   : > { %s3281_s14 = smov %s3278_s12 }
 0xdd6   :  { %2083 = vsyncpa [#allocation3], 1 }
 0xdd7   :  { %2085 = vsyncpa [#allocation3 + $0x1], 1 }

</bundles_post_ra>
